<compile_context>
chip_gen: v7x
topology: tpu7x:2x2x1
jax: 0.10.0
libtpu: 0.0.40
codegen_flags: <defaults>
</compile_context>

<pallas_src>
import functools

import jax
import jax.numpy as jnp
import numpy as np
from jax.experimental import pallas as pl
from jax.experimental.pallas import tpu as pltpu

_SMALL_DIM = 8       # output dims <= this bypass the MXU (VPU mul + XLU reduce)
_DEFAULT_TILE = 512  # lane-axis batch tile (multiple of 128)

# "NT" matmul: contract the trailing dim of both operands (lhs [M,K] x rhs [N,K]).
_NT_DIMS = (((1,), (1,)), ((), ()))


def _elu(z):
    # nn.ELU(alpha=1.0).  Clamp the exp argument so the unselected branch of
    # the where never overflows for large positive z.
    # TODO(synk): switch to jnp.expm1 once confirmed supported by the Mosaic
    # lowering; exp(min(z,0)) - 1 is overflow-safe and accurate enough here.
    return jnp.where(z > 0, z, jnp.exp(jnp.minimum(z, 0.0)) - 1.0)


def _mlp_kernel(modes, use_bf16, x_ref, *refs):
    """Fused MLP forward on one batch tile.

    refs = (w_0, b_0, ..., w_{L-1}, b_{L-1}, out_ref).
    modes[i] selects the per-layer codepath:
      "nt"     : first layer; consumes the batch-major [T, d_in] input tile and
                 produces a feature-major [out, T] result by contracting the
                 trailing dim of both operands on the MXU (the layout change is
                 fused into the matmul -- no separate transpose / relayout, and
                 no wrapper-side x.T HBM pass).
      "mxu"    : hidden layer, w [out, in]: MXU matmul, batch on lanes.
      "small_m": tiny output dim, w pre-transposed to [in, out]: VPU multiply
                 + sublane (XLU) reduce instead of a near-empty MXU push.
    Biases are [out, 1]; activations after layer 0 are [features, batch_tile].
    """
    out_ref = refs[-1]
    param_refs = refs[:-1]
    n_layers = len(modes)

    h = x_ref[...]  # layer-0 input: batch-major [batch_tile, d_in], f32

    for layer, mode in enumerate(modes):
        w = param_refs[2 * layer][...]
        b = param_refs[2 * layer + 1][...]          # [out, 1]
        if mode == "nt":
            z = jax.lax.dot_general(
                w, h, _NT_DIMS, preferred_element_type=jnp.float32) + b
        elif mode == "small_m":
            out_f = w.shape[1]
            rows = [
                jnp.sum(w[:, j:j + 1] * h, axis=0, keepdims=True) + b[j:j + 1, :]
                for j in range(out_f)
            ]
            z = rows[0] if out_f == 1 else jnp.concatenate(rows, axis=0)
        else:  # "mxu": hidden-layer matmul, batch (lane) axis is the MXU N dim
            if use_bf16:
                # Optional fast path: bf16 operands, f32 accumulation -- cuts
                # the multi-pass f32 MXU decomposition ~3x on v6e/v7x.  The
                # ELU / VPU math below stays f32.
                z = jnp.dot(w.astype(jnp.bfloat16), h.astype(jnp.bfloat16),
                            preferred_element_type=jnp.float32) + b
            else:
                z = jnp.dot(w, h, preferred_element_type=jnp.float32) + b
        h = z if layer == n_layers - 1 else _elu(z)

    out_ref[...] = h.astype(out_ref.dtype)


def _round_up(v, m):
    return ((v + m - 1) // m) * m


def _auto_batch_tile(n):
    """Lane-axis batch tile: one tile for tiny N, else 512-wide tiles.

    512 amortizes the ~0.35us/grid-step fixed cost (~85% of the HBM roofline
    in the tiled-add sweep vs ~29% at 128), keeps the (32, T) f32 activations
    inside v5e's 64-vreg file (h + z ~= 32 vregs), and any N > 512 yields >= 2
    independent grid steps so both v7x TensorCores get work.  Sweep via the
    batch_tile argument if profiling suggests otherwise.
    """
    n128 = _round_up(max(int(n), 1), 128)
    return n128 if n128 <= _DEFAULT_TILE else _DEFAULT_TILE


def mlp_forward(x, params, *, batch_tile=None, use_bf16_matmul=False):
    """Fused MLP forward.

    x: [N, d_in] float32 (PyTorch layout; left in place in HBM).
    params: list of (W [out, in], b [out]) per layer (PyTorch nn.Linear).
    Returns [N, d_out] float32.
    """
    x = jnp.asarray(x, jnp.float32)
    n, d_in = x.shape
    d_out = params[-1][0].shape[0]

    if batch_tile is None:
        batch_tile = _auto_batch_tile(n)
    if batch_tile % 128 != 0:
        raise ValueError("batch_tile must be a multiple of 128 (lane width)")

    steps = int(pl.cdiv(n, batch_tile))
    n_pad = steps * batch_tile
    if n_pad != n:
        # TODO(synk): mask the ragged last tile in-kernel instead of this small
        # HBM pad copy; for PINN-scale runs choose N as a multiple of the tile
        # upstream so this branch never triggers.
        x = jnp.pad(x, ((0, n_pad - n), (0, 0)))

    # Per-layer codepath + matching parameter layout (wrapper-side glue only).
    modes, flat_params = [], []
    flops = 0
    transcendentals = 0
    n_layers = len(params)
    for li, (w, b) in enumerate(params):
        w = jnp.asarray(w, jnp.float32)                 # [out, in]
        b = jnp.asarray(b, jnp.float32).reshape(-1, 1)  # [out, 1]
        out_f, in_f = w.shape
        flops += (2 * in_f + 1) * out_f * n_pad
        if li != n_layers - 1:
            transcendentals += out_f * n_pad            # one exp per ELU element
        if li == 0:
            modes.append("nt")
            flat_params += [w, b]
        elif out_f <= _SMALL_DIM:
            modes.append("small_m")
            flat_params += [w.T, b]                     # [in, out]
        else:
            modes.append("mxu")
            flat_params += [w, b]

    # Batch-major input tiles stream straight from the PyTorch-layout array;
    # the feature-major [d_out, T] output tiles are lane-dense (unmasked vst).
    in_specs = [pl.BlockSpec((batch_tile, d_in), lambda i: (i, 0))]
    for p in flat_params:
        # Full-array parameter blocks, constant index map, single buffer:
        # DMA'd once, VMEM-resident across all grid steps, no per-step
        # buffer-swap bookkeeping.
        in_specs.append(pl.BlockSpec(p.shape, lambda i: (0, 0),
                                     pipeline_mode=pl.Buffered(1)))
    out_spec = pl.BlockSpec((d_out, batch_tile), lambda i: (0, i))

    param_bytes = sum(4 * int(np.prod(p.shape)) for p in flat_params)
    cost = pl.CostEstimate(
        flops=int(flops),
        transcendentals=int(transcendentals),
        bytes_accessed=int(4 * n_pad * (d_in + d_out) + param_bytes),
    )

    kernel = functools.partial(_mlp_kernel, tuple(modes), use_bf16_matmul)

    out_t = pl.pallas_call(
        kernel,
        out_shape=jax.ShapeDtypeStruct((d_out, n_pad), jnp.float32),
        grid_spec=pltpu.PrefetchScalarGridSpec(
            num_scalar_prefetch=0,
            grid=(steps,),
            in_specs=in_specs,
            out_specs=out_spec,
        ),
        compiler_params=pltpu.CompilerParams(
            # Batch tiles are independent: shard the grid across both v7x
            # TensorCores (plain sequential loop on v5e/v6e).  Per-tile VMEM is
            # a few hundred KB, far below every generation's limit.  If an
            # xprof check shows the axis not actually splitting across cores,
            # switch to pltpu.CORE_PARALLEL.
            dimension_semantics=("parallel",),
        ),
        cost_estimate=cost,
    )(x, *flat_params)

    if n_pad != n:
        out_t = out_t[:, :n]
    # [d_out, N] -> [N, d_out]; a free degenerate-dim reshape when d_out == 1
    # (the PINN case), so no extra HBM pass on the output either.
    return out_t.T


def init_params(key, seq_net, *, nonzero_bias=False):
    """Mirror the PyTorch module init: W ~ U(-1/sqrt(fan_in), 1/sqrt(fan_in))
    (nn.Linear default), bias = 0 (nn.init.constant_).  nonzero_bias=True draws
    random biases instead so the bias-add path is actually exercised."""
    params = []
    for i in range(len(seq_net) - 1):
        fan_in, fan_out = seq_net[i], seq_net[i + 1]
        key, kw, kb = jax.random.split(key, 3)
        bound = 1.0 / float(np.sqrt(fan_in))
        w = jax.random.uniform(kw, (fan_out, fan_in), jnp.float32,
                               minval=-bound, maxval=bound)
        if nonzero_bias:
            b = jax.random.uniform(kb, (fan_out,), jnp.float32,
                                   minval=-bound, maxval=bound)
        else:
            b = jnp.zeros((fan_out,), jnp.float32)
        params.append((w, b))
    return params


def mlp_reference_f64(x, params):
    """float64 numpy reference of the PyTorch forward (ground truth)."""
    h = np.asarray(x, np.float64)
    n_layers = len(params)
    for i, (w, b) in enumerate(params):
        h = h @ np.asarray(w, np.float64).T + np.asarray(b, np.float64)
        if i != n_layers - 1:
            h = np.where(h > 0.0, h, np.expm1(np.minimum(h, 0.0)))
    return h


if __name__ == "__main__":
    # Typical PINN MLP: 2 inputs (x, t) -> 3 hidden layers of 32 -> 1 output.
    seq_net = [2, 32, 32, 32, 1]

    key = jax.random.PRNGKey(0)
    key_x, key_p = jax.random.split(key)
    params = init_params(key_p, seq_net, nonzero_bias=True)

    # Case 1: tile-divisible batch -> zero wrapper-side HBM copies, auto tile
    # = 512, grid = (2,) so both v7x TensorCores get a tile.
    n = 1024
    x = jax.random.normal(key_x, (n, seq_net[0]), jnp.float32)
    out = jax.block_until_ready(mlp_forward(x, params))
    ref = mlp_reference_f64(x, params)
    assert out.shape == (n, seq_net[-1])
    err = float(np.max(np.abs(np.asarray(out, np.float64) - ref)))
    # Tolerance leaves headroom for the MXU's multi-pass f32 scheme vs the f64
    # reference; a real layout/logic bug would be O(0.1-1) off.
    assert err < 5e-3, f"f32 path mismatch: max|err| = {err}"

    # Case 2: optional bf16 MXU operands for the hidden layers (f32 accumulate),
    # validated separately at a tolerance appropriate for bf16 inputs.
    out_bf16 = jax.block_until_ready(mlp_forward(x, params, use_bf16_matmul=True))
    err_bf16 = float(np.max(np.abs(np.asarray(out_bf16, np.float64) - ref)))
    assert err_bf16 < 3e-2, f"bf16 path mismatch: max|err| = {err_bf16}"

    # Case 3: ragged batch (300 pads to one 384-wide tile, sliced back).
    n_r = 300
    x_r = jax.random.normal(key_x, (n_r, seq_net[0]), jnp.float32)
    out_r = jax.block_until_ready(mlp_forward(x_r, params))
    ref_r = mlp_reference_f64(x_r, params)
    assert out_r.shape == (n_r, seq_net[-1])
    err_r = float(np.max(np.abs(np.asarray(out_r, np.float64) - ref_r)))
    assert err_r < 5e-3, f"ragged-tail path mismatch: max|err| = {err_r}"

    print("KERNEL_OK")
</pallas_src>

<mosaic_0001>
module attributes {stable_mosaic.version = 11 : i64} {
  func.func @_mlp_kernel(%arg0: i32, %arg1: memref<512x2xf32, #tpu.memory_space<vmem>>, %arg2: memref<32x2xf32, #tpu.memory_space<vmem>>, %arg3: memref<32x1xf32, #tpu.memory_space<vmem>>, %arg4: memref<32x32xf32, #tpu.memory_space<vmem>>, %arg5: memref<32x1xf32, #tpu.memory_space<vmem>>, %arg6: memref<32x32xf32, #tpu.memory_space<vmem>>, %arg7: memref<32x1xf32, #tpu.memory_space<vmem>>, %arg8: memref<32x1xf32, #tpu.memory_space<vmem>>, %arg9: memref<1x1xf32, #tpu.memory_space<vmem>>, %arg10: memref<1x512xf32, #tpu.memory_space<vmem>>) attributes {dimension_semantics = [#tpu.dimension_semantics<parallel>], iteration_bounds = array<i64: 2>, scalar_prefetch = 0 : i64, scratch_operands = 0 : i64, tpu.core_type = #tpu.core_type<tc>, window_params = [{transform_indices = @transform_0, window_bounds = array<i64: 512, 2>}, {pipeline_mode = #tpu.pipeline_mode<synchronous>, transform_indices = @transform_1, window_bounds = array<i64: 32, 2>}, {pipeline_mode = #tpu.pipeline_mode<synchronous>, transform_indices = @transform_2, window_bounds = array<i64: 32, 1>}, {pipeline_mode = #tpu.pipeline_mode<synchronous>, transform_indices = @transform_3, window_bounds = array<i64: 32, 32>}, {pipeline_mode = #tpu.pipeline_mode<synchronous>, transform_indices = @transform_4, window_bounds = array<i64: 32, 1>}, {pipeline_mode = #tpu.pipeline_mode<synchronous>, transform_indices = @transform_5, window_bounds = array<i64: 32, 32>}, {pipeline_mode = #tpu.pipeline_mode<synchronous>, transform_indices = @transform_6, window_bounds = array<i64: 32, 1>}, {pipeline_mode = #tpu.pipeline_mode<synchronous>, transform_indices = @transform_7, window_bounds = array<i64: 32, 1>}, {pipeline_mode = #tpu.pipeline_mode<synchronous>, transform_indices = @transform_8, window_bounds = array<i64: 1, 1>}, {transform_indices = @transform_9, window_bounds = array<i64: 1, 512>}]} {
    %c0 = arith.constant 0 : index
    %c0_0 = arith.constant 0 : index
    %0 = vector.load %arg1[%c0, %c0_0] : memref<512x2xf32, #tpu.memory_space<vmem>>, vector<512x2xf32>
    %c0_1 = arith.constant 0 : index
    %c0_2 = arith.constant 0 : index
    %1 = vector.load %arg2[%c0_1, %c0_2] : memref<32x2xf32, #tpu.memory_space<vmem>>, vector<32x2xf32>
    %c0_3 = arith.constant 0 : index
    %c0_4 = arith.constant 0 : index
    %2 = vector.load %arg3[%c0_3, %c0_4] : memref<32x1xf32, #tpu.memory_space<vmem>>, vector<32x1xf32>
    %cst = arith.constant dense<0.000000e+00> : vector<32x512xf32>
    %3 = tpu.matmul %1, %0, %cst {dimension_numbers = #tpu.dot_dimension_numbers<[1], [1], [0], [0], [0, 0, 1, 0], [], []>} : vector<32x2xf32>, vector<512x2xf32>, vector<32x512xf32> -> vector<32x512xf32>
    %4 = vector.broadcast %2 : vector<32x1xf32> to vector<32x512xf32>
    %5 = arith.addf %3, %4 : vector<32x512xf32>
    %cst_5 = arith.constant 0.000000e+00 : f32
    %6 = vector.broadcast %cst_5 : f32 to vector<32x512xf32>
    %7 = arith.cmpf ogt, %5, %6 : vector<32x512xf32>
    %cst_6 = arith.constant 0.000000e+00 : f32
    %8 = vector.broadcast %cst_6 : f32 to vector<32x512xf32>
    %9 = arith.minimumf %5, %8 : vector<32x512xf32>
    %10 = math.exp %9 : vector<32x512xf32>
    %cst_7 = arith.constant 1.000000e+00 : f32
    %11 = vector.broadcast %cst_7 : f32 to vector<32x512xf32>
    %12 = arith.subf %10, %11 : vector<32x512xf32>
    %13 = arith.select %7, %5, %12 : vector<32x512xi1>, vector<32x512xf32>
    %c0_8 = arith.constant 0 : index
    %c0_9 = arith.constant 0 : index
    %14 = vector.load %arg4[%c0_8, %c0_9] : memref<32x32xf32, #tpu.memory_space<vmem>>, vector<32x32xf32>
    %c0_10 = arith.constant 0 : index
    %c0_11 = arith.constant 0 : index
    %15 = vector.load %arg5[%c0_10, %c0_11] : memref<32x1xf32, #tpu.memory_space<vmem>>, vector<32x1xf32>
    %cst_12 = arith.constant dense<0.000000e+00> : vector<32x512xf32>
    %16 = tpu.matmul %14, %13, %cst_12 {dimension_numbers = #tpu.dot_dimension_numbers<[1], [0], [0], [1], [0, 0, 1, 1], [], []>} : vector<32x32xf32>, vector<32x512xf32>, vector<32x512xf32> -> vector<32x512xf32>
    %17 = vector.broadcast %15 : vector<32x1xf32> to vector<32x512xf32>
    %18 = arith.addf %16, %17 : vector<32x512xf32>
    %cst_13 = arith.constant 0.000000e+00 : f32
    %19 = vector.broadcast %cst_13 : f32 to vector<32x512xf32>
    %20 = arith.cmpf ogt, %18, %19 : vector<32x512xf32>
    %cst_14 = arith.constant 0.000000e+00 : f32
    %21 = vector.broadcast %cst_14 : f32 to vector<32x512xf32>
    %22 = arith.minimumf %18, %21 : vector<32x512xf32>
    %23 = math.exp %22 : vector<32x512xf32>
    %cst_15 = arith.constant 1.000000e+00 : f32
    %24 = vector.broadcast %cst_15 : f32 to vector<32x512xf32>
    %25 = arith.subf %23, %24 : vector<32x512xf32>
    %26 = arith.select %20, %18, %25 : vector<32x512xi1>, vector<32x512xf32>
    %c0_16 = arith.constant 0 : index
    %c0_17 = arith.constant 0 : index
    %27 = vector.load %arg6[%c0_16, %c0_17] : memref<32x32xf32, #tpu.memory_space<vmem>>, vector<32x32xf32>
    %c0_18 = arith.constant 0 : index
    %c0_19 = arith.constant 0 : index
    %28 = vector.load %arg7[%c0_18, %c0_19] : memref<32x1xf32, #tpu.memory_space<vmem>>, vector<32x1xf32>
    %cst_20 = arith.constant dense<0.000000e+00> : vector<32x512xf32>
    %29 = tpu.matmul %27, %26, %cst_20 {dimension_numbers = #tpu.dot_dimension_numbers<[1], [0], [0], [1], [0, 0, 1, 1], [], []>} : vector<32x32xf32>, vector<32x512xf32>, vector<32x512xf32> -> vector<32x512xf32>
    %30 = vector.broadcast %28 : vector<32x1xf32> to vector<32x512xf32>
    %31 = arith.addf %29, %30 : vector<32x512xf32>
    %cst_21 = arith.constant 0.000000e+00 : f32
    %32 = vector.broadcast %cst_21 : f32 to vector<32x512xf32>
    %33 = arith.cmpf ogt, %31, %32 : vector<32x512xf32>
    %cst_22 = arith.constant 0.000000e+00 : f32
    %34 = vector.broadcast %cst_22 : f32 to vector<32x512xf32>
    %35 = arith.minimumf %31, %34 : vector<32x512xf32>
    %36 = math.exp %35 : vector<32x512xf32>
    %cst_23 = arith.constant 1.000000e+00 : f32
    %37 = vector.broadcast %cst_23 : f32 to vector<32x512xf32>
    %38 = arith.subf %36, %37 : vector<32x512xf32>
    %39 = arith.select %33, %31, %38 : vector<32x512xi1>, vector<32x512xf32>
    %c0_24 = arith.constant 0 : index
    %c0_25 = arith.constant 0 : index
    %40 = vector.load %arg8[%c0_24, %c0_25] : memref<32x1xf32, #tpu.memory_space<vmem>>, vector<32x1xf32>
    %c0_26 = arith.constant 0 : index
    %c0_27 = arith.constant 0 : index
    %41 = vector.load %arg9[%c0_26, %c0_27] : memref<1x1xf32, #tpu.memory_space<vmem>>, vector<1x1xf32>
    %42 = vector.broadcast %40 : vector<32x1xf32> to vector<32x512xf32>
    %43 = arith.mulf %42, %39 : vector<32x512xf32>
    %cst_28 = arith.constant dense<0.000000e+00> : vector<512xf32>
    %44 = vector.multi_reduction <add>, %43, %cst_28 [0] : vector<32x512xf32> to vector<512xf32>
    %45 = vector.shape_cast %44 : vector<512xf32> to vector<1x512xf32>
    %46 = vector.broadcast %41 : vector<1x1xf32> to vector<1x512xf32>
    %47 = arith.addf %45, %46 : vector<1x512xf32>
    %c0_29 = arith.constant 0 : index
    %c0_30 = arith.constant 0 : index
    %48 = vector.load %arg10[%c0_29, %c0_30] : memref<1x512xf32, #tpu.memory_space<vmem>>, vector<1x512xf32>
    tpu.vector_store %arg10[%c0_29, %c0_30], %47 {strides = array<i32>} : memref<1x512xf32, #tpu.memory_space<vmem>>, vector<1x512xf32>,
    return
  }
  func.func @transform_0(%arg0: i32) -> (i32, i32) {
    %c0_i32 = arith.constant 0 : i32
    %c0_i32_0 = arith.constant 0 : i32
    return %arg0, %c0_i32 : i32, i32
  }
  func.func @transform_1(%arg0: i32) -> (i32, i32) {
    %c0_i32 = arith.constant 0 : i32
    %c0_i32_0 = arith.constant 0 : i32
    %c0_i32_1 = arith.constant 0 : i32
    return %c0_i32, %c0_i32_0 : i32, i32
  }
  func.func @transform_2(%arg0: i32) -> (i32, i32) {
    %c0_i32 = arith.constant 0 : i32
    %c0_i32_0 = arith.constant 0 : i32
    %c0_i32_1 = arith.constant 0 : i32
    return %c0_i32, %c0_i32_0 : i32, i32
  }
  func.func @transform_3(%arg0: i32) -> (i32, i32) {
    %c0_i32 = arith.constant 0 : i32
    %c0_i32_0 = arith.constant 0 : i32
    %c0_i32_1 = arith.constant 0 : i32
    return %c0_i32, %c0_i32_0 : i32, i32
  }
  func.func @transform_4(%arg0: i32) -> (i32, i32) {
    %c0_i32 = arith.constant 0 : i32
    %c0_i32_0 = arith.constant 0 : i32
    %c0_i32_1 = arith.constant 0 : i32
    return %c0_i32, %c0_i32_0 : i32, i32
  }
  func.func @transform_5(%arg0: i32) -> (i32, i32) {
    %c0_i32 = arith.constant 0 : i32
    %c0_i32_0 = arith.constant 0 : i32
    %c0_i32_1 = arith.constant 0 : i32
    return %c0_i32, %c0_i32_0 : i32, i32
  }
  func.func @transform_6(%arg0: i32) -> (i32, i32) {
    %c0_i32 = arith.constant 0 : i32
    %c0_i32_0 = arith.constant 0 : i32
    %c0_i32_1 = arith.constant 0 : i32
    return %c0_i32, %c0_i32_0 : i32, i32
  }
  func.func @transform_7(%arg0: i32) -> (i32, i32) {
    %c0_i32 = arith.constant 0 : i32
    %c0_i32_0 = arith.constant 0 : i32
    %c0_i32_1 = arith.constant 0 : i32
    return %c0_i32, %c0_i32_0 : i32, i32
  }
  func.func @transform_8(%arg0: i32) -> (i32, i32) {
    %c0_i32 = arith.constant 0 : i32
    %c0_i32_0 = arith.constant 0 : i32
    %c0_i32_1 = arith.constant 0 : i32
    return %c0_i32, %c0_i32_0 : i32, i32
  }
  func.func @transform_9(%arg0: i32) -> (i32, i32) {
    %c0_i32 = arith.constant 0 : i32
    %c0_i32_0 = arith.constant 0 : i32
    return %c0_i32, %arg0 : i32, i32
  }
}

</mosaic_0001>

<bundles_post_ra>
// kernel: tpu_custom_call.1
= control target key start
LH: loop header
LB: loop body
LE: loop exit
PB: predicated region body
PF: predicated region fallthrough
CT: control target
= control target key end

     0   :  { %s3009_s0 = inlined_call_operand.vmem [shape: f32[1024,2], index: 0, kind: input, shape index: {}]   ;;  %s3010_s1 = inlined_call_operand.vmem [shape: f32[32,2], index: 1, kind: input, shape index: {}]   ;;  %s3011_s2 = inlined_call_operand.vmem [shape: f32[32,1], index: 2, kind: input, shape index: {}]   ;;  %s3012_s3 = inlined_call_operand.vmem [shape: f32[32,32], index: 3, kind: input, shape index: {}]   ;;  %s3013_s4 = inlined_call_operand.vmem [shape: f32[32,1], index: 4, kind: input, shape index: {}]   ;;  %s3014_s5 = inlined_call_operand.vmem [shape: f32[32,32], index: 5, kind: input, shape index: {}]   ;;  %s3015_s6 = inlined_call_operand.vmem [shape: f32[32,1], index: 6, kind: input, shape index: {}]   ;;  %s3016_s7 = inlined_call_operand.vmem [shape: f32[32,1], index: 7, kind: input, shape index: {}]   ;;  %s3017_s8 = inlined_call_operand.<no memory space> [shape: f32[1,1], index: 8, kind: input, shape index: {}]   ;;  %s3018_s9 = inlined_call_operand.hbm [shape: f32[1,1024], index: 9, kind: output, shape index: {}]  }
   0x1   :  { %v14_v0 = vstv %s3017_s8 }
   0x2   :  { %15 = vst [vmem:[#allocation2] sm:$0x1] %v14_v0 }
   0x3   :  { %16 = vsyncpa [#allocation4], 0 }
   0x4   :  { %18 = vsyncpa [#allocation4 + $0x1], 0  ;;  %s2352_s11 = smov 0   ;;  %s2354_s12 = smov 0  }
   0x5   :  { %s2356_s13 = smov 0   ;;  %s2358_s14 = smov 0  }
   0x6 LB: > { %s1733_s8 = sadd.s32 4294967295, %s2293_s14   ;;  %s1734_s15 = sadd.s32 4294967294, %s2293_s14   ;;  %s2293_s14 = sphi %s2358_s14, %s3026_s14   ;;  %s2289_s13 = sphi %s2356_s13, %s3025_s13   ;;  %s2285_s12 = sphi %s2354_s12, %s3024_s12   ;;  %s2281_s11 = sphi %s2352_s11, %s3023_s11  }
   0x7   : > { %s2375_s16 = sadd.s32 1, %s2293_s14   ;;  %s225_s17 = sadd.s32 1, %s2289_s13 }
   0x8   : > { %s222_s18 = ssub.s32 %s2293_s14, %s2375_s16  ;;  %p235_p0 = scmp.ne.s32.totalorder %s2289_s13, %s2285_s12 }
   0x9   : > { %p223_p1 = scmp.eq.s32.totalorder %s222_s18, 0  ;;  %p236_p2 = scmp.eq.s32.totalorder %s1733_s8, 1 }
   0xa   : > { %p241_p3 = scmp.ne.s32.totalorder %s2285_s12, %s2281_s11  ;;  %p242_p4 = scmp.eq.s32.totalorder %s1734_s15, 1 }
   0xb   : > { %s2385_s19 = scalar_select %p223_p1, %s2289_s13, %s225_s17  }
   0xc   : > { %p2387_p5 = por %p236_p2, %p235_p0  ;;  %p2391_p6 = por %p242_p4, %p241_p3 }
   0xd   : > { %p1737_p7 = scmp.ge.s32.totalorder %s2293_s14, 1  ;;  %p293_p8 = scmp.lt.s32.totalorder %s2293_s14, 3 }
   0xf   : > { %p294_p9 = pnand %p1737_p7, %p293_p8 }
  0x10   : > { %s2397_s22 = sshll.u32 (!%p294_p9), %s1733_s8, 6  ;;  %vm428_vm0 = vcmask (!%p294_p9), 15360   ;;  %v2402_v1 = vld [vmem:[%s3010_s1] sm:$0xff] (!%p294_p9)  ;;  %v2295_v3 = vmov (!%p294_p9), 0   ;;  %v406_v4 = vld [vmem:[%s3011_s2 + $0x10] sm:$0xff] (!%p294_p9)  ;;  %v405_v5 = vld [vmem:[%s3011_s2 + $0x8] sm:$0xff] (!%p294_p9) }
  0x11   : > { %297 = sbr.rel (%p294_p9) target bundleno = 895 (0x37f), region = 56  ;;  %p330_p10 = scmp.lt.s32.totalorder (!%p294_p9), %s2397_s22, 127  ;;  %1915 = vmatprep.mubr.msk.f32.mxu0 (!%p294_p9), %vm428_vm0, %v2402_v1  ;;  %1955 = vmatprep.mubr.msk.f32.mxu1 (!%p294_p9), %vm428_vm0, %v2402_v1  ;;  %v404_v2 = vld [vmem:[%s3011_s2] sm:$0xff] (!%p294_p9)  ;;  %v407_v6 = vld [vmem:[%s3011_s2 + $0x18] sm:$0xff] (!%p294_p9)  ;;  %vm2429_vm1 = vmpackc.low (!%p294_p9), %vm428_vm0, %vm428_vm0  ;;  %v2296_v7 = vmov (!%p294_p9), 0.0  }
  0x12   : > { %2133 = vset.pattern.permute.xlu0 (!%p294_p9), %v2295_v3  ;;  %2134 = vset.pattern.permute.xlu1 (!%p294_p9), %v2295_v3  ;;  %v911_v11 = vld [vmem:[%s3013_s4] sm:$0xff] (!%p294_p9)  ;;  %v913_v27 = vld [vmem:[%s3013_s4 + $0x10] sm:$0xff] (!%p294_p9)  ;;  %v912_v28 = vld [vmem:[%s3013_s4 + $0x8] sm:$0xff] (!%p294_p9)  ;;  %s326_s15 = sand.u32 (!%p294_p9), 1, %s2285_s12  }
  0x13   : > { %410 = vperm.xlu0 (!%p294_p9), %2133, %v404_v2   ;;  %420 = vperm.xlu1 (!%p294_p9), %2134, %v406_v4   ;;  %v914_v38 = vld [vmem:[%s3013_s4 + $0x18] sm:$0xff] (!%p294_p9)  ;;  %v1226_v42 = vld [vmem:[%s3015_s6] sm:$0xff] (!%p294_p9)  ;;  %v1227_v43 = vld [vmem:[%s3015_s6 + $0x8] sm:$0xff] (!%p294_p9)  ;;  %s1661_s27 = scalar_lea.sflag (!%p294_p9), [#allocation4], %s326_s15 }
  0x14   : > { %v1228_v52 = vld [vmem:[%s3015_s6 + $0x10] sm:$0xff] (!%p294_p9)  ;;  %v1229_v54 = vld [vmem:[%s3015_s6 + $0x18] sm:$0xff] (!%p294_p9)  ;;  %v1536_v58 = vld [vmem:[%s3016_s7] sm:$0xff] (!%p294_p9) }
  0x15   : > { %v1537_v59 = vld [vmem:[%s3016_s7 + $0x8] sm:$0xff] (!%p294_p9) }
  0x17   : > { %415 = vperm.xlu0 (!%p294_p9), %2133, %v405_v5   ;;  %425 = vperm.xlu1 (!%p294_p9), %2134, %v407_v6   ;;  %v1538_v5 = vld [vmem:[%s3016_s7 + $0x10] sm:$0xff] (!%p294_p9) }
  0x18   : > { %s331_s29 = scalar_select %p330_p10, %s2397_s22, 127 }
  0x1a   : > { %s1740_s17 = sshll.u32 %s331_s29, 3  ;;  %s2298_s29 = smov [#allocation3]  }
  0x1b   : > { %s2425_s24 = scalar_lea.vmem %s3009_s0, %s1740_s17  ;;  %917 = vperm.xlu0 %2133, %v911_v11   ;;  %922 = vperm.xlu1 %2134, %v912_v28   ;;  %s1738_s17 = sshll.u32 %s326_s15, 2 }
  0x1c   : > { %v352_v8 = vld [vmem:[%s2425_s24 + $0x80] sm:$0xff]  ;;  %v353_v9 = vld [vmem:[%s2425_s24 + $0x88] sm:$0xff]  ;;  %v354_v20 = vld [vmem:[%s2425_s24 + $0x90] sm:$0xff]  ;;  %s328_s18 = scalar_lea.vmem [#allocation3], %s1738_s17  ;;  %s2235_s30 = sshll.u32 %s2298_s29, 4  ;;  %s2236_s30 = int_to_ptr.vmem [resolvable:$false] %s2235_s30 }
  0x1d   : > { %v384_v10 = vld [vmem:[%s2425_s24 + $0x180] sm:$0xff]  ;;  %v1963_v12 = vpack.c.bf16 %v353_v9, %v352_v8  ;;  %v385_v13 = vld [vmem:[%s2425_s24 + $0x188] sm:$0xff]  ;;  %v355_v22 = vld [vmem:[%s2425_s24 + $0x98] sm:$0xff]  ;;  %s1675_s23 = sshll.u32 %s328_s18, 4  ;;  %s2237_s10 = scalar_lea.vmem %s2236_s30, 128  ;;  %s2969_s23 = int_to_ptr.vmem [resolvable:$true] %s1675_s23 }
  0x1e   : > { %v336_v14 = vld [vmem:[%s2425_s24] sm:$0xff]  ;;  %v337_v15 = vld [vmem:[%s2425_s24 + $0x8] sm:$0xff]  ;;  %v2011_v16 = vpack.c.bf16 %v385_v13, %v384_v10  ;;  %v386_v23 = vld [vmem:[%s2425_s24 + $0x190] sm:$0xff]  ;;  %v1969_v25 = vpack.c.bf16 %v355_v22, %v354_v20  ;;  %s2231_s28 = scalar_lea.vmem %s2969_s23, 64  ;;  %p2238_p0 = scmp.lt.s32.totalorder %s2969_s23, %s2236_s30 }
  0x1f   : > { %v1966_v17 = vpack.c.bf16 %v337_v15, %v336_v14  ;;  %v368_v18 = vld [vmem:[%s2425_s24 + $0x100] sm:$0xff]  ;;  %v369_v19 = vld [vmem:[%s2425_s24 + $0x108] sm:$0xff]  ;;  %1965 = vmatprep.subr.msk.bf16.mxu0 %vm2429_vm1, %v1963_v12  ;;  %v387_v24 = vld [vmem:[%s2425_s24 + $0x198] sm:$0xff]  ;;  %927 = vperm.xlu0 %2133, %v913_v27   ;;  %p2232_p11 = scmp.ne.s32.totalorder %s2969_s23, %s2231_s28  ;;  %p2239_p1 = scmp.lt.s32.totalorder %s2237_s10, %s2231_s28 }
  0x20   : > { %v2014_v21 = vpack.c.bf16 %v369_v19, %v368_v18  ;;  %2013 = vmatprep.subr.msk.bf16.mxu1 %vm2429_vm1, %v2011_v16  ;;  %v2017_v26 = vpack.c.bf16 %v387_v24, %v386_v23  ;;  %v338_v29 = vld [vmem:[%s2425_s24 + $0x10] sm:$0xff]  ;;  %v339_v30 = vld [vmem:[%s2425_s24 + $0x18] sm:$0xff]  ;;  %v356_v33 = vld [vmem:[%s2425_s24 + $0xa0] sm:$0xff]  ;;  %932 = vperm.xlu1 %2134, %v914_v38  }
  0x21   : > { %1968 = vmatpush3.bf16.xpose.msk.msra.mxu0 %vm2429_vm1, %v1966_v17  ;;  %v370_v31 = vld [vmem:[%s2425_s24 + $0x110] sm:$0xff]  ;;  %v371_v32 = vld [vmem:[%s2425_s24 + $0x118] sm:$0xff]  ;;  %v357_v34 = vld [vmem:[%s2425_s24 + $0xa8] sm:$0xff]  ;;  %v1972_v37 = vpack.c.bf16 %v339_v30, %v338_v29  ;;  %p2233_p12 = pnand %p2232_p11, %p2387_p5  ;;  %p2240_p2 = por %p2239_p1, %p2238_p0 }
  0x22   : > { %2016 = vmatpush3.bf16.xpose.msk.msra.mxu1 %vm2429_vm1, %v2014_v21  ;;  %1971 = vmatprep.subr.msk.bf16.mxu0 %vm2429_vm1, %v1969_v25  ;;  %v388_v35 = vld [vmem:[%s2425_s24 + $0x1a0] sm:$0xff]  ;;  %v389_v36 = vld [vmem:[%s2425_s24 + $0x1a8] sm:$0xff]  ;;  %v2020_v39 = vpack.c.bf16 %v371_v32, %v370_v31  ;;  %v1975_v40 = vpack.c.bf16 %v357_v34, %v356_v33  ;;  %v358_v48 = vld [vmem:[%s2425_s24 + $0xb0] sm:$0xff] }
  0x23   : > { %2019 = vmatprep.subr.msk.bf16.mxu1 %vm2429_vm1, %v2017_v26  ;;  %v2023_v41 = vpack.c.bf16 %v389_v36, %v388_v35  ;;  %v340_v44 = vld [vmem:[%s2425_s24 + $0x20] sm:$0xff]  ;;  %v341_v45 = vld [vmem:[%s2425_s24 + $0x28] sm:$0xff]  ;;  %v359_v49 = vld [vmem:[%s2425_s24 + $0xb8] sm:$0xff]  ;;  %1232 = vperm.xlu0 %2133, %v1226_v42   ;;  %p2234_p13 = pneg %p2233_p12 }
  0x24   : > { %v372_v46 = vld [vmem:[%s2425_s24 + $0x120] sm:$0xff]  ;;  %v373_v47 = vld [vmem:[%s2425_s24 + $0x128] sm:$0xff]  ;;  %v390_v50 = vld [vmem:[%s2425_s24 + $0x1b0] sm:$0xff]  ;;  %1237 = vperm.xlu1 %2134, %v1227_v43   ;;  %v1978_v53 = vpack.c.bf16 %v341_v45, %v340_v44  ;;  %v1981_v56 = vpack.c.bf16 %v359_v49, %v358_v48 }
  0x25   : > { %v391_v51 = vld [vmem:[%s2425_s24 + $0x1b8] sm:$0xff]  ;;  %v2026_v55 = vpack.c.bf16 %v373_v47, %v372_v46  ;;  %v342_v60 = vld [vmem:[%s2425_s24 + $0x30] sm:$0xff]  ;;  %v360_v0 = vld [vmem:[%s2425_s24 + $0xc0] sm:$0xff]  ;;  %p2241_p3 = pnand %p2240_p2, %p2234_p13 }
  0x26   : > { %v2029_v57 = vpack.c.bf16 %v391_v51, %v390_v50  ;;  %v343_v61 = vld [vmem:[%s2425_s24 + $0x38] sm:$0xff]  ;;  %v374_v62 = vld [vmem:[%s2425_s24 + $0x130] sm:$0xff]  ;;  %v361_v2 = vld [vmem:[%s2425_s24 + $0xc8] sm:$0xff] }
  0x27   : > { %1242 = vperm.xlu0 %2133, %v1228_v52   ;;  %v375_v63 = vld [vmem:[%s2425_s24 + $0x138] sm:$0xff]  ;;  %v392_v3 = vld [vmem:[%s2425_s24 + $0x1c0] sm:$0xff]  ;;  %v393_v4 = vld [vmem:[%s2425_s24 + $0x1c8] sm:$0xff]  ;;  %v1984_v6 = vpack.c.bf16 %v343_v61, %v342_v60  ;;  %v1987_v10 = vpack.c.bf16 %v361_v2, %v360_v0 }
  0x28   : > { %1247 = vperm.xlu1 %2134, %v1229_v54   ;;  %v1539_v8 = vld [vmem:[%s3016_s7 + $0x18] sm:$0xff]  ;;  %v2032_v9 = vpack.c.bf16 %v375_v63, %v374_v62  ;;  %v2035_v11 = vpack.c.bf16 %v393_v4, %v392_v3  ;;  %v1540_v12 = vld [vmem:[#allocation2] sm:$0x1]  ;;  %v345_v14 = vld [vmem:[%s2425_s24 + $0x48] sm:$0xff] }
  0x29   : > { %1974 = vmatpush3.bf16.xpose.msk.msra.mxu0 %vm2429_vm1, %v1972_v37  ;;  %v344_v13 = vld [vmem:[%s2425_s24 + $0x40] sm:$0xff]  ;;  %v377_v16 = vld [vmem:[%s2425_s24 + $0x148] sm:$0xff]  ;;  %v362_v17 = vld [vmem:[%s2425_s24 + $0xd0] sm:$0xff] }
  0x2a   : > { %2022 = vmatpush3.bf16.xpose.msk.msra.mxu1 %vm2429_vm1, %v2020_v39  ;;  %1977 = vmatprep.subr.msk.bf16.mxu0 %vm2429_vm1, %v1975_v40  ;;  %v376_v15 = vld [vmem:[%s2425_s24 + $0x140] sm:$0xff]  ;;  %v363_v18 = vld [vmem:[%s2425_s24 + $0xd8] sm:$0xff]  ;;  %v394_v19 = vld [vmem:[%s2425_s24 + $0x1d0] sm:$0xff]  ;;  %v1990_v21 = vpack.c.bf16 %v345_v14, %v344_v13 }
  0x2b   : > { %2025 = vmatprep.subr.msk.bf16.mxu1 %vm2429_vm1, %v2023_v41  ;;  %1543 = vperm.xlu0 %2133, %v1536_v58   ;;  %v395_v20 = vld [vmem:[%s2425_s24 + $0x1d8] sm:$0xff]  ;;  %v2038_v22 = vpack.c.bf16 %v377_v16, %v376_v15  ;;  %v1993_v23 = vpack.c.bf16 %v363_v18, %v362_v17  ;;  %v346_v25 = vld [vmem:[%s2425_s24 + $0x50] sm:$0xff]  ;;  %v364_v29 = vld [vmem:[%s2425_s24 + $0xe0] sm:$0xff] }
  0x2c   : > { %1548 = vperm.xlu1 %2134, %v1537_v59   ;;  %v2041_v24 = vpack.c.bf16 %v395_v20, %v394_v19  ;;  %v347_v26 = vld [vmem:[%s2425_s24 + $0x58] sm:$0xff]  ;;  %v378_v27 = vld [vmem:[%s2425_s24 + $0x150] sm:$0xff]  ;;  %v365_v30 = vld [vmem:[%s2425_s24 + $0xe8] sm:$0xff] }
  0x2d   : > { %v379_v28 = vld [vmem:[%s2425_s24 + $0x158] sm:$0xff]  ;;  %v396_v31 = vld [vmem:[%s2425_s24 + $0x1e0] sm:$0xff]  ;;  %v397_v32 = vld [vmem:[%s2425_s24 + $0x1e8] sm:$0xff]  ;;  %v1996_v33 = vpack.c.bf16 %v347_v26, %v346_v25  ;;  %v1999_v35 = vpack.c.bf16 %v365_v30, %v364_v29 }
  0x2e   : > { %v2044_v34 = vpack.c.bf16 %v379_v28, %v378_v27  ;;  %v2047_v36 = vpack.c.bf16 %v397_v32, %v396_v31  ;;  %v348_v37 = vld [vmem:[%s2425_s24 + $0x60] sm:$0xff]  ;;  %v349_v38 = vld [vmem:[%s2425_s24 + $0x68] sm:$0xff]  ;;  %v366_v41 = vld [vmem:[%s2425_s24 + $0xf0] sm:$0xff] }
  0x2f   : > { %1553 = vperm.xlu0 %2133, %v1538_v5   ;;  %v380_v39 = vld [vmem:[%s2425_s24 + $0x160] sm:$0xff]  ;;  %v381_v40 = vld [vmem:[%s2425_s24 + $0x168] sm:$0xff]  ;;  %v367_v42 = vld [vmem:[%s2425_s24 + $0xf8] sm:$0xff]  ;;  %v2002_v45 = vpack.c.bf16 %v349_v38, %v348_v37 }
  0x30   : > { %1558 = vperm.xlu1 %2134, %v1539_v8   ;;  %v398_v43 = vld [vmem:[%s2425_s24 + $0x1f0] sm:$0xff]  ;;  %v399_v44 = vld [vmem:[%s2425_s24 + $0x1f8] sm:$0xff]  ;;  %v2050_v46 = vpack.c.bf16 %v381_v40, %v380_v39  ;;  %v2005_v47 = vpack.c.bf16 %v367_v42, %v366_v41 }
  0x31   : > { %1980 = vmatpush3.bf16.xpose.msk.msra.mxu0 %vm2429_vm1, %v1978_v53  ;;  %v2053_v48 = vpack.c.bf16 %v399_v44, %v398_v43  ;;  %v350_v49 = vld [vmem:[%s2425_s24 + $0x70] sm:$0xff]  ;;  %v351_v50 = vld [vmem:[%s2425_s24 + $0x78] sm:$0xff] }
  0x32   : > { %2028 = vmatpush3.bf16.xpose.msk.msra.mxu1 %vm2429_vm1, %v2026_v55  ;;  %1983 = vmatprep.subr.msk.bf16.mxu0 %vm2429_vm1, %v1981_v56  ;;  %v382_v51 = vld [vmem:[%s2425_s24 + $0x170] sm:$0xff]  ;;  %v383_v52 = vld [vmem:[%s2425_s24 + $0x178] sm:$0xff]  ;;  %v2008_v53 = vpack.c.bf16 %v351_v50, %v350_v49  ;;  %v401_v55 = vld [vmem:[%s3010_s1 + $0x8] sm:$0xff]  ;;  %s2967_s24 = scalar_lea.hbm %s3018_s9, %s2397_s22 }
  0x33   : > { %2031 = vmatprep.subr.msk.bf16.mxu1 %vm2429_vm1, %v2029_v57  ;;  %1615 = vperm.xlu0 %2133, %v1540_v12   ;;  %v2056_v54 = vpack.c.bf16 %v383_v52, %v382_v51  ;;  %v402_v56 = vld [vmem:[%s3010_s1 + $0x10] sm:$0xff] }
  0x39   : > { %1986 = vmatpush3.bf16.xpose.msk.msra.mxu0 %vm2429_vm1, %v1984_v6 }
  0x3a   : > { %2034 = vmatpush3.bf16.xpose.msk.msra.mxu1 %vm2429_vm1, %v2032_v9  ;;  %1989 = vmatprep.subr.msk.bf16.mxu0 %vm2429_vm1, %v1987_v10 }
  0x3b   : > { %2037 = vmatprep.subr.msk.bf16.mxu1 %vm2429_vm1, %v2035_v11 }
  0x41   : > { %1992 = vmatpush3.bf16.xpose.msk.msra.mxu0 %vm2429_vm1, %v1990_v21 }
  0x42   : > { %2040 = vmatpush3.bf16.xpose.msk.msra.mxu1 %vm2429_vm1, %v2038_v22  ;;  %1995 = vmatprep.subr.msk.bf16.mxu0 %vm2429_vm1, %v1993_v23 }
  0x43   : > { %2043 = vmatprep.subr.msk.bf16.mxu1 %vm2429_vm1, %v2041_v24 }
  0x49   : > { %1998 = vmatpush3.bf16.xpose.msk.msra.mxu0 %vm2429_vm1, %v1996_v33 }
  0x4a   : > { %2046 = vmatpush3.bf16.xpose.msk.msra.mxu1 %vm2429_vm1, %v2044_v34  ;;  %2001 = vmatprep.subr.msk.bf16.mxu0 %vm2429_vm1, %v1999_v35 }
  0x4b   : > { %2049 = vmatprep.subr.msk.bf16.mxu1 %vm2429_vm1, %v2047_v36 }
  0x51   : > { %2004 = vmatpush3.bf16.xpose.msk.msra.mxu0 %vm2429_vm1, %v2002_v45 }
  0x52   : > { %2052 = vmatpush3.bf16.xpose.msk.msra.mxu1 %vm2429_vm1, %v2050_v46  ;;  %2007 = vmatprep.subr.msk.bf16.mxu0 %vm2429_vm1, %v2005_v47 }
  0x53   : > { %2055 = vmatprep.subr.msk.bf16.mxu1 %vm2429_vm1, %v2053_v48 }
  0x59   : > { %2010 = vmatpush3.bf16.xpose.msk.msra.mxu0 %vm2429_vm1, %v2008_v53 }
  0x5a   : > { %2058 = vmatpush3.bf16.xpose.msk.msra.mxu1 %vm2429_vm1, %v2056_v54 }
  0x60   : > { %1916 = vmatmul.mubr.msk.f32.vlgmr.msra.gmra.mrb[0].mxu0 %vm428_vm0, %v2402_v1 }
  0x61   : > { %1956 = vmatmul.mubr.msk.f32.vlgmr.msra.gmra.mrb[0].mxu1 %vm428_vm0, %v2402_v1  ;;  %1917 = vmatprep.mubr.msk.f32.mxu0 %vm428_vm0, %v401_v55  ;;  %v403_v1 = vld [vmem:[%s3010_s1 + $0x18] sm:$0xff] }
  0x62   : > { %1957 = vmatprep.mubr.msk.f32.mxu1 %vm428_vm0, %v401_v55 }
  0x64   : > { %1918 = vmatmul.mubr.msk.f32.gmra.mrb[2].mxu0 %vm428_vm0, %v401_v55 }
  0x65   : > { %1958 = vmatmul.mubr.msk.f32.gmra.mrb[2].mxu1 %vm428_vm0, %v401_v55  ;;  %1919 = vmatprep.mubr.msk.f32.mxu0 %vm428_vm0, %v402_v56 }
  0x66   : > { %1959 = vmatprep.mubr.msk.f32.mxu1 %vm428_vm0, %v402_v56 }
  0x68   : > { %1920 = vmatmul.mubr.msk.f32.gmra.mrb[4].mxu0 %vm428_vm0, %v402_v56 }
  0x69   : > { %1960 = vmatmul.mubr.msk.f32.gmra.mrb[4].mxu1 %vm428_vm0, %v402_v56  ;;  %1921 = vmatprep.mubr.msk.f32.mxu0 %vm428_vm0, %v403_v1 }
  0x6a   : > { %1961 = vmatprep.mubr.msk.f32.mxu1 %vm428_vm0, %v403_v1 }
  0x6c   : > { %1922 = vmatmul.mubr.msk.f32.gmra.mrb[6].mxu0 %vm428_vm0, %v403_v1 }
  0x6d   : > { %1962 = vmatmul.mubr.msk.f32.gmra.mrb[6].mxu1 %vm428_vm0, %v403_v1  ;;  %1012 = vmatprep.mubr.f32.mxu0 %v2296_v7 }
  0x6e   : > { %1101 = vmatprep.mubr.f32.mxu1 %v2296_v7 }
  0x92   : > { %v411_v57 = vpop.permute.xlu0 %410  ;;  %v421_v14 = vpop.permute.xlu1 %420 }
  0x96   : > { %v416_v4 = vpop.permute.xlu0 %415  ;;  %v426_v35 = vpop.permute.xlu1 %425 }
 0x133   : > { %v699_v58 = vpop.f32.mrb[0].mxu0 }
 0x134   : > { %v2624_v59 = vadd.f32 %v699_v58, %v411_v57  ;;  %v788_v60 = vpop.f32.mrb[0].mxu1  ;;  %v701_v61 = vpop.f32.mrb[1].mxu0 }
 0x135   : > { %v2626_v62 = vadd.f32 %v788_v60, %v411_v57  ;;  %v2628_v63 = vadd.f32 %v701_v61, %v411_v57  ;;  %v790_v0 = vpop.f32.mrb[1].mxu1 }
 0x136   : > { %v827_v2 = vmin.f32 %v2624_v59, 0.0  ;;  %v2631_v3 = vadd.f32 %v790_v0, %v411_v57  ;;  %vm811_vm2 = vcmp.gt.f32.partialorder %v2624_v59, 0.0 }
 0x137   : > { %v829_v5 = vmin.f32 %v2626_v62, 0.0  ;;  %v828_v6 = vmin.f32 %v2628_v63, 0.0  ;;  %v705_v8 = vpop.f32.mrb[2].mxu0  ;;  %vm813_vm3 = vcmp.gt.f32.partialorder %v2626_v62, 0.0  ;;  %vm812_vm4 = vcmp.gt.f32.partialorder %v2628_v63, 0.0 }
 0x138   : > { %v843_v9 = vmul.f32 1.442695, %v827_v2  ;;  %v830_v10 = vmin.f32 %v2631_v3, 0.0  ;;  %v2636_v11 = vadd.f32 %v705_v8, %v416_v4  ;;  %v794_v12 = vpop.f32.mrb[2].mxu1  ;;  %v707_v13 = vpop.f32.mrb[3].mxu0  ;;  %vm814_vm8 = vcmp.gt.f32.partialorder %v2631_v3, 0.0 }
 0x139   : > { %v847_v15 = vmul.f32 1.442695, %v829_v5  ;;  %v845_v16 = vmul.f32 1.442695, %v828_v6  ;;  %v2638_v17 = vadd.f32 %v794_v12, %v416_v4  ;;  %v2640_v18 = vadd.f32 %v707_v13, %v416_v4  ;;  %v796_v19 = vpop.f32.mrb[3].mxu1 }
 0x13a   : > { %2135 = vpow2.f32 %v843_v9  ;;  %v849_v20 = vmul.f32 1.442695, %v830_v10  ;;  %v831_v21 = vmin.f32 %v2636_v11, 0.0  ;;  %v2645_v26 = vadd.f32 %v796_v19, %v416_v4 }
 0x13b   : > { %2137 = vpow2.f32 %v847_v15  ;;  %v833_v22 = vmin.f32 %v2638_v17, 0.0  ;;  %v711_v23 = vpop.f32.mrb[4].mxu0  ;;  %v832_v25 = vmin.f32 %v2640_v18, 0.0  ;;  %vm815_vm5 = vcmp.gt.f32.partialorder %v2636_v11, 0.0 }
 0x13c   : > { %2139 = vpow2.f32 %v845_v16  ;;  %v851_v24 = vmul.f32 1.442695, %v831_v21  ;;  %v800_v27 = vpop.f32.mrb[4].mxu1  ;;  %v713_v28 = vpop.f32.mrb[5].mxu0  ;;  %v2647_v30 = vadd.f32 %v711_v23, %v421_v14  ;;  %v834_v34 = vmin.f32 %v2645_v26, 0.0 }
 0x13d   : > { %2141 = vpow2.f32 %v849_v20  ;;  %v855_v29 = vmul.f32 1.442695, %v833_v22  ;;  %v2649_v31 = vadd.f32 %v800_v27, %v421_v14  ;;  %v802_v32 = vpop.f32.mrb[5].mxu1  ;;  %v853_v33 = vmul.f32 1.442695, %v832_v25 }
 0x13e   : > { %2143 = vpow2.f32 %v851_v24  ;;  %v835_v36 = vmin.f32 %v2647_v30, 0.0  ;;  %v857_v38 = vmul.f32 1.442695, %v834_v34  ;;  %v2654_v40 = vadd.f32 %v713_v28, %v421_v14 }
 0x13f   : > { %2145 = vpow2.f32 %v855_v29  ;;  %v717_v37 = vpop.f32.mrb[6].mxu0  ;;  %v837_v39 = vmin.f32 %v2649_v31, 0.0  ;;  %v2656_v44 = vadd.f32 %v802_v32, %v421_v14  ;;  %vm817_vm6 = vcmp.gt.f32.partialorder %v2638_v17, 0.0 }
 0x140   : > { %2147 = vpow2.f32 %v853_v33  ;;  %v806_v41 = vpop.f32.mrb[6].mxu1  ;;  %v719_v42 = vpop.f32.mrb[7].mxu0  ;;  %v859_v43 = vmul.f32 1.442695, %v835_v36  ;;  %v2658_v45 = vadd.f32 %v717_v37, %v426_v35  ;;  %v836_v49 = vmin.f32 %v2654_v40, 0.0 }
 0x141   : > { %v2660_v46 = vadd.f32 %v806_v41, %v426_v35  ;;  %v808_v47 = vpop.f32.mrb[7].mxu1  ;;  %2149 = vpow2.f32 %v857_v38  ;;  %v863_v48 = vmul.f32 1.442695, %v837_v39  ;;  %v838_v50 = vmin.f32 %v2656_v44, 0.0 }
 0x142   : > { %2151 = vpow2.f32 %v859_v43  ;;  %v861_v52 = vmul.f32 1.442695, %v836_v49  ;;  %v839_v53 = vmin.f32 %v2658_v45, 0.0  ;;  %v2668_v1 = vadd.f32 %v719_v42, %v426_v35 }
 0x143   : > { %2153 = vpow2.f32 %v863_v48  ;;  %v841_v56 = vmin.f32 %v2660_v46, 0.0  ;;  %v865_v60 = vmul.f32 1.442695, %v838_v50  ;;  %v2670_v0 = vadd.f32 %v808_v47, %v426_v35 }
 0x144   : > { %v2136_v51 = vpop.eup %2135  ;;  %v867_v61 = vmul.f32 1.442695, %v839_v53  ;;  %2155 = vpow2.f32 %v861_v52  ;;  %vm816_vm7 = vcmp.gt.f32.partialorder %v2640_v18, 0.0  ;;  %v840_v12 = vmin.f32 %v2668_v1, 0.0 }
 0x145   : > { %v2138_v54 = vpop.eup %2137  ;;  %v1813_v55 = vadd.f32 -1.0, %v2136_v51  ;;  %v871_v4 = vmul.f32 1.442695, %v841_v56  ;;  %v842_v16 = vmin.f32 %v2670_v0, 0.0  ;;  %vm818_vm9 = vcmp.gt.f32.partialorder %v2645_v26, 0.0 }
 0x146   : > { %v2140_v57 = vpop.eup %2139  ;;  %v1815_v58 = vadd.f32 -1.0, %v2138_v54  ;;  %2157 = vpow2.f32 %v867_v61  ;;  %vm819_vm10 = vcmp.gt.f32.partialorder %v2647_v30, 0.0  ;;  %vm823_vm11 = vcmp.gt.f32.partialorder %v2658_v45, 0.0 }
 0x147   : > { %v2142_v2 = vpop.eup %2141  ;;  %v1814_v6 = vadd.f32 -1.0, %v2140_v57  ;;  %v891_v9 = vsel %vm811_vm2, %v2624_v59, %v1813_v55  ;;  %2159 = vpow2.f32 %v871_v4  ;;  %v869_v59 = vmul.f32 1.442695, %v840_v12  ;;  %v923_v12 = vpop.permute.xlu1 %922 }
 0x148   : > { %v2144_v5 = vpop.eup %2143  ;;  %v893_v14 = vsel %vm813_vm3, %v2626_v62, %v1815_v58  ;;  %2161 = vpow2.f32 %v865_v60  ;;  %v1816_v19 = vadd.f32 -1.0, %v2142_v2  ;;  %v873_v25 = vmul.f32 1.442695, %v842_v16  ;;  %v907_v58 = vld [vmem:[%s3012_s3] sm:$0xff]  ;;  %v918_v60 = vpop.permute.xlu0 %917 }
 0x149   : > { %v2146_v8 = vpop.eup %2145  ;;  %v1817_v10 = vadd.f32 -1.0, %v2144_v5  ;;  %v892_v62 = vsel %vm812_vm4, %v2628_v63, %v1814_v6  ;;  %2163 = vpow2.f32 %v869_v59  ;;  %vm821_vm12 = vcmp.gt.f32.partialorder %v2649_v31, 0.0 }
 0x14a   : > { %v2148_v13 = vpop.eup %2147  ;;  %v1819_v15 = vadd.f32 -1.0, %v2146_v8  ;;  %2165 = vpow2.f32 %v873_v25  ;;  %v894_v33 = vsel %vm814_vm8, %v2631_v3, %v1816_v19  ;;  %vm825_vm13 = vcmp.gt.f32.partialorder %v2660_v46, 0.0 }
 0x14b   : > { %v895_v20 = vsel %vm815_vm5, %v2636_v11, %v1817_v10  ;;  %v1818_v21 = vadd.f32 -1.0, %v2148_v13  ;;  %v2150_v22 = vpop.eup %2149  ;;  %vm820_vm14 = vcmp.gt.f32.partialorder %v2654_v40, 0.0  ;;  %vm824_vm15 = vcmp.gt.f32.partialorder %v2668_v1, 0.0 }
 0x14c   : > { %v2061_v23 = vpack.c.bf16 %v895_v20, %v891_v9  ;;  %v897_v24 = vsel %vm817_vm6, %v2638_v17, %v1819_v15  ;;  %v1820_v28 = vadd.f32 -1.0, %v2150_v22  ;;  %v2152_v29 = vpop.eup %2151  ;;  %vm822_vm0 = vcmp.gt.f32.partialorder %v2656_v44, 0.0 }
 0x14d   : > { %v2069_v27 = vpack.c.bf16 %v897_v24, %v893_v14  ;;  %v896_v11 = vsel %vm816_vm7, %v2640_v18, %v1818_v21  ;;  %v2154_v17 = vpop.eup %2153  ;;  %v1821_v36 = vadd.f32 -1.0, %v2152_v29  ;;  %vm826_vm1 = vcmp.gt.f32.partialorder %v2670_v0, 0.0 }
 0x14e   : > { %v2059_v32 = vpack.c.bf16 %v896_v11, %v892_v62  ;;  %v898_v34 = vsel %vm818_vm9, %v2645_v26, %v1820_v28  ;;  %v2156_v35 = vpop.eup %2155  ;;  %v1823_v38 = vadd.f32 -1.0, %v2154_v17  ;;  %vm935_vm2 = vcmask 261120   ;;  %v928_v11 = vpop.permute.xlu0 %927 }
 0x14f   : > { %v2067_v63 = vpack.c.bf16 %v898_v34, %v894_v33  ;;  %v899_v3 = vsel %vm819_vm10, %v2647_v30, %v1821_v36  ;;  %v1822_v47 = vadd.f32 -1.0, %v2156_v35 }
 0x150   : > { %2060 = vmatprep.subr.bf16.mxu0 %v2059_v32  ;;  %v2158_v37 = vpop.eup %2157  ;;  %v901_v43 = vsel %vm821_vm12, %v2649_v31, %v1823_v38 }
 0x151   : > { %2062 = vmatpush1.bf16.msra.mxu0 %v2061_v23  ;;  %2068 = vmatprep.subr.bf16.mxu1 %v2067_v63  ;;  %v2160_v18 = vpop.eup %2159  ;;  %v1825_v39 = vadd.f32 -1.0, %v2158_v37  ;;  %v900_v31 = vsel %vm820_vm14, %v2654_v40, %v1822_v47  ;;  %v908_v40 = vld [vmem:[%s3012_s3 + $0x8] sm:$0xff] }
 0x152   : > { %2070 = vmatpush1.bf16.msra.mxu1 %v2069_v27  ;;  %v2162_v41 = vpop.eup %2161  ;;  %v1827_v42 = vadd.f32 -1.0, %v2160_v18 }
 0x153   : > { %v903_v26 = vsel %vm823_vm11, %v2658_v45, %v1825_v39  ;;  %v2164_v50 = vpop.eup %2163  ;;  %v1824_v51 = vadd.f32 -1.0, %v2162_v41 }
 0x154   : > { %v2065_v48 = vpack.c.bf16 %v903_v26, %v899_v3  ;;  %v905_v49 = vsel %vm825_vm13, %v2660_v46, %v1827_v42  ;;  %v2166_v53 = vpop.eup %2165  ;;  %v1826_v54 = vadd.f32 -1.0, %v2164_v50  ;;  %v933_v42 = vpop.permute.xlu1 %932 }
 0x155   : > { %v2073_v52 = vpack.c.bf16 %v905_v49, %v901_v43  ;;  %v1828_v30 = vadd.f32 -1.0, %v2166_v53  ;;  %v902_v46 = vsel %vm822_vm0, %v2656_v44, %v1824_v51  ;;  %v909_v44 = vld [vmem:[%s3012_s3 + $0x10] sm:$0xff] }
 0x156   : > { %v904_v45 = vsel %vm824_vm15, %v2668_v1, %v1826_v54  ;;  %v910_v1 = vld [vmem:[%s3012_s3 + $0x18] sm:$0xff] }
 0x157   : > { %v2063_v55 = vpack.c.bf16 %v904_v45, %v900_v31  ;;  %v906_v56 = vsel %vm826_vm1, %v2670_v0, %v1828_v30 }
 0x158   : > { %v2071_v57 = vpack.c.bf16 %v906_v56, %v902_v46 }
 0x159   : > { %2064 = vmatprep.subr.bf16.mxu0 %v2063_v55 }
 0x15a   : > { %2072 = vmatprep.subr.bf16.mxu1 %v2071_v57  ;;  %2066 = vmatpush1.bf16.msra.mxu0 %v2065_v48 }
 0x15b   : > { %2074 = vmatpush1.bf16.msra.mxu1 %v2073_v52 }
 0x15d   : > { %1829 = vmatmul.mubr.msk.f32.vlgmr.msra.gmra.mrb[8].mxu0 %vm935_vm2, %v907_v58 }
 0x15e   : > { %1833 = vmatmul.mubr.msk.f32.vlgmr.msra.gmra.mrb[8].mxu1 %vm935_vm2, %v907_v58  ;;  %1018 = vmatprep.mubr.f32.mxu0 %v2296_v7 }
 0x15f   : > { %1107 = vmatprep.mubr.f32.mxu1 %v2296_v7 }
 0x161   : > { %1830 = vmatmul.mubr.msk.f32.gmra.mrb[10].mxu0 %vm935_vm2, %v908_v40 }
 0x162   : > { %1834 = vmatmul.mubr.msk.f32.gmra.mrb[10].mxu1 %vm935_vm2, %v908_v40  ;;  %1024 = vmatprep.mubr.f32.mxu0 %v2296_v7 }
 0x163   : > { %1113 = vmatprep.mubr.f32.mxu1 %v2296_v7 }
 0x165   : > { %1831 = vmatmul.mubr.msk.f32.gmra.mrb[12].mxu0 %vm935_vm2, %v909_v44 }
 0x166   : > { %1835 = vmatmul.mubr.msk.f32.gmra.mrb[12].mxu1 %vm935_vm2, %v909_v44  ;;  %1030 = vmatprep.mubr.f32.mxu0 %v2296_v7 }
 0x167   : > { %1119 = vmatprep.mubr.f32.mxu1 %v2296_v7 }
 0x169   : > { %1832 = vmatmul.mubr.msk.f32.gmra.mrb[14].mxu0 %vm935_vm2, %v910_v1 }
 0x16a   : > { %1836 = vmatmul.mubr.msk.f32.gmra.mrb[14].mxu1 %vm935_vm2, %v910_v1  ;;  %1326 = vmatprep.mubr.f32.mxu0 %v2296_v7 }
 0x16b   : > { %1415 = vmatprep.mubr.f32.mxu1 %v2296_v7 }
 0x230   : > { %v1014_v61 = vpop.f32.mrb[8].mxu0 }
 0x231   : > { %v2744_v0 = vadd.f32 %v1014_v61, %v918_v60  ;;  %v1103_v2 = vpop.f32.mrb[8].mxu1  ;;  %v1016_v4 = vpop.f32.mrb[9].mxu0 }
 0x232   : > { %v2746_v5 = vadd.f32 %v1103_v2, %v918_v60  ;;  %v2748_v6 = vadd.f32 %v1016_v4, %v918_v60  ;;  %v1105_v8 = vpop.f32.mrb[9].mxu1 }
 0x233   : > { %v1142_v9 = vmin.f32 %v2744_v0, 0.0  ;;  %v2751_v10 = vadd.f32 %v1105_v8, %v918_v60  ;;  %vm1126_vm3 = vcmp.gt.f32.partialorder %v2744_v0, 0.0 }
 0x234   : > { %v1144_v13 = vmin.f32 %v2746_v5, 0.0  ;;  %v1143_v14 = vmin.f32 %v2748_v6, 0.0  ;;  %v1020_v15 = vpop.f32.mrb[10].mxu0  ;;  %vm1128_vm4 = vcmp.gt.f32.partialorder %v2746_v5, 0.0  ;;  %vm1127_vm5 = vcmp.gt.f32.partialorder %v2748_v6, 0.0 }
 0x235   : > { %v1158_v16 = vmul.f32 1.442695, %v1142_v9  ;;  %v1145_v19 = vmin.f32 %v2751_v10, 0.0  ;;  %v2756_v20 = vadd.f32 %v1020_v15, %v923_v12  ;;  %v1109_v21 = vpop.f32.mrb[10].mxu1  ;;  %v1022_v59 = vpop.f32.mrb[11].mxu0  ;;  %vm1129_vm9 = vcmp.gt.f32.partialorder %v2751_v10, 0.0 }
 0x236   : > { %v1162_v22 = vmul.f32 1.442695, %v1144_v13  ;;  %v1160_v23 = vmul.f32 1.442695, %v1143_v14  ;;  %v2758_v24 = vadd.f32 %v1109_v21, %v923_v12  ;;  %v2760_v25 = vadd.f32 %v1022_v59, %v923_v12  ;;  %v1111_v62 = vpop.f32.mrb[11].mxu1 }
 0x237   : > { %2167 = vpow2.f32 %v1158_v16  ;;  %v1164_v27 = vmul.f32 1.442695, %v1145_v19  ;;  %v1146_v28 = vmin.f32 %v2756_v20, 0.0  ;;  %v2765_v34 = vadd.f32 %v1111_v62, %v923_v12 }
 0x238   : > { %2169 = vpow2.f32 %v1162_v22  ;;  %v1148_v29 = vmin.f32 %v2758_v24, 0.0  ;;  %v1026_v32 = vpop.f32.mrb[12].mxu0  ;;  %v1147_v33 = vmin.f32 %v2760_v25, 0.0  ;;  %vm1130_vm6 = vcmp.gt.f32.partialorder %v2756_v20, 0.0 }
 0x239   : > { %2171 = vpow2.f32 %v1160_v23  ;;  %v1166_v17 = vmul.f32 1.442695, %v1146_v28  ;;  %v1115_v63 = vpop.f32.mrb[12].mxu1  ;;  %v1028_v35 = vpop.f32.mrb[13].mxu0  ;;  %v2767_v37 = vadd.f32 %v1026_v32, %v928_v11  ;;  %v1149_v41 = vmin.f32 %v2765_v34, 0.0 }
 0x23a   : > { %2173 = vpow2.f32 %v1164_v27  ;;  %v1170_v36 = vmul.f32 1.442695, %v1148_v29  ;;  %v2769_v38 = vadd.f32 %v1115_v63, %v928_v11  ;;  %v1117_v18 = vpop.f32.mrb[13].mxu1  ;;  %v1168_v39 = vmul.f32 1.442695, %v1147_v33 }
 0x23b   : > { %2175 = vpow2.f32 %v1166_v17  ;;  %v1150_v3 = vmin.f32 %v2767_v37, 0.0  ;;  %v1172_v43 = vmul.f32 1.442695, %v1149_v41  ;;  %v2774_v48 = vadd.f32 %v1028_v35, %v928_v11 }
 0x23c   : > { %2177 = vpow2.f32 %v1170_v36  ;;  %v1032_v26 = vpop.f32.mrb[14].mxu0  ;;  %v1152_v47 = vmin.f32 %v2769_v38, 0.0  ;;  %v2776_v52 = vadd.f32 %v1117_v18, %v928_v11  ;;  %vm1132_vm7 = vcmp.gt.f32.partialorder %v2758_v24, 0.0 }
 0x23d   : > { %2179 = vpow2.f32 %v1168_v39  ;;  %v1121_v49 = vpop.f32.mrb[14].mxu1  ;;  %v1034_v50 = vpop.f32.mrb[15].mxu0  ;;  %v1174_v51 = vmul.f32 1.442695, %v1150_v3  ;;  %v2778_v53 = vadd.f32 %v1032_v26, %v933_v42  ;;  %v1151_v45 = vmin.f32 %v2774_v48, 0.0 }
 0x23e   : > { %v2780_v54 = vadd.f32 %v1121_v49, %v933_v42  ;;  %v1123_v30 = vpop.f32.mrb[15].mxu1  ;;  %2181 = vpow2.f32 %v1172_v43  ;;  %v1178_v31 = vmul.f32 1.442695, %v1152_v47  ;;  %v1153_v55 = vmin.f32 %v2776_v52, 0.0 }
 0x23f   : > { %2183 = vpow2.f32 %v1174_v51  ;;  %v1176_v56 = vmul.f32 1.442695, %v1151_v45  ;;  %v1154_v57 = vmin.f32 %v2778_v53, 0.0  ;;  %v2788_v1 = vadd.f32 %v1034_v50, %v933_v42 }
 0x240   : > { %2185 = vpow2.f32 %v1178_v31  ;;  %v1156_v44 = vmin.f32 %v2780_v54, 0.0  ;;  %v1180_v2 = vmul.f32 1.442695, %v1153_v55  ;;  %v2790_v8 = vadd.f32 %v1123_v30, %v933_v42 }
 0x241   : > { %v2168_v46 = vpop.eup %2167  ;;  %v1182_v4 = vmul.f32 1.442695, %v1154_v57  ;;  %2187 = vpow2.f32 %v1176_v56  ;;  %vm1131_vm8 = vcmp.gt.f32.partialorder %v2760_v25, 0.0  ;;  %v1155_v21 = vmin.f32 %v2788_v1, 0.0 }
 0x242   : > { %v2170_v58 = vpop.eup %2169  ;;  %v1837_v40 = vadd.f32 -1.0, %v2168_v46  ;;  %v1186_v12 = vmul.f32 1.442695, %v1156_v44  ;;  %v1157_v62 = vmin.f32 %v2790_v8, 0.0  ;;  %vm1133_vm10 = vcmp.gt.f32.partialorder %v2765_v34, 0.0 }
 0x243   : > { %v2172_v60 = vpop.eup %2171  ;;  %v1839_v61 = vadd.f32 -1.0, %v2170_v58  ;;  %2189 = vpow2.f32 %v1182_v4  ;;  %vm1134_vm11 = vcmp.gt.f32.partialorder %v2767_v37, 0.0  ;;  %vm1138_vm12 = vcmp.gt.f32.partialorder %v2778_v53, 0.0 }
 0x244   : > { %v2174_v9 = vpop.eup %2173  ;;  %v1838_v14 = vadd.f32 -1.0, %v2172_v60  ;;  %v1206_v16 = vsel %vm1126_vm3, %v2744_v0, %v1837_v40  ;;  %2191 = vpow2.f32 %v1186_v12  ;;  %v1184_v0 = vmul.f32 1.442695, %v1155_v21 }
 0x245   : > { %v2176_v13 = vpop.eup %2175  ;;  %v1208_v22 = vsel %vm1128_vm4, %v2746_v5, %v1839_v61  ;;  %2193 = vpow2.f32 %v1180_v2  ;;  %v1840_v27 = vadd.f32 -1.0, %v2174_v9  ;;  %v1188_v33 = vmul.f32 1.442695, %v1157_v62  ;;  %v1222_v61 = vld [vmem:[%s3014_s5] sm:$0xff]  ;;  %v1233_v2 = vpop.permute.xlu0 %1232 }
 0x246   : > { %v2178_v15 = vpop.eup %2177  ;;  %v1841_v19 = vadd.f32 -1.0, %v2176_v13  ;;  %v1207_v5 = vsel %vm1127_vm5, %v2748_v6, %v1838_v14  ;;  %2195 = vpow2.f32 %v1184_v0  ;;  %vm1136_vm13 = vcmp.gt.f32.partialorder %v2769_v38, 0.0 }
 0x247   : > { %v2180_v59 = vpop.eup %2179  ;;  %v1843_v23 = vadd.f32 -1.0, %v2178_v15  ;;  %2197 = vpow2.f32 %v1188_v33  ;;  %v1209_v39 = vsel %vm1129_vm9, %v2751_v10, %v1840_v27  ;;  %vm1140_vm14 = vcmp.gt.f32.partialorder %v2780_v54, 0.0 }
 0x248   : > { %v1210_v28 = vsel %vm1130_vm6, %v2756_v20, %v1841_v19  ;;  %v1842_v11 = vadd.f32 -1.0, %v2180_v59  ;;  %v2182_v29 = vpop.eup %2181  ;;  %vm1135_vm15 = vcmp.gt.f32.partialorder %v2774_v48, 0.0  ;;  %vm1139_vm0 = vcmp.gt.f32.partialorder %v2788_v1, 0.0 }
 0x249   : > { %v2077_v32 = vpack.c.bf16 %v1210_v28, %v1206_v16  ;;  %v1212_v17 = vsel %vm1132_vm7, %v2758_v24, %v1843_v23  ;;  %v1844_v35 = vadd.f32 -1.0, %v2182_v29  ;;  %v2184_v36 = vpop.eup %2183  ;;  %vm1137_vm1 = vcmp.gt.f32.partialorder %v2776_v52, 0.0 }
 0x24a   : > { %v2085_v63 = vpack.c.bf16 %v1212_v17, %v1208_v22  ;;  %v1211_v20 = vsel %vm1131_vm8, %v2760_v25, %v1842_v11  ;;  %v2186_v24 = vpop.eup %2185  ;;  %v1845_v3 = vadd.f32 -1.0, %v2184_v36  ;;  %vm1141_vm3 = vcmp.gt.f32.partialorder %v2790_v8, 0.0 }
 0x24b   : > { %v2075_v18 = vpack.c.bf16 %v1211_v20, %v1207_v5  ;;  %v1213_v41 = vsel %vm1133_vm10, %v2765_v34, %v1844_v35  ;;  %v2188_v42 = vpop.eup %2187  ;;  %v1847_v43 = vadd.f32 -1.0, %v2186_v24  ;;  %v1243_v35 = vpop.permute.xlu0 %1242 }
 0x24c   : > { %v2083_v6 = vpack.c.bf16 %v1213_v41, %v1209_v39  ;;  %v1214_v10 = vsel %vm1134_vm11, %v2767_v37, %v1845_v3  ;;  %v1846_v30 = vadd.f32 -1.0, %v2188_v42 }
 0x24d   : > { %2076 = vmatprep.subr.bf16.mxu0 %v2075_v18  ;;  %v2190_v26 = vpop.eup %2189  ;;  %v1216_v51 = vsel %vm1136_vm13, %v2769_v38, %v1847_v43 }
 0x24e   : > { %2078 = vmatpush1.bf16.msra.mxu0 %v2077_v32  ;;  %2084 = vmatprep.subr.bf16.mxu1 %v2083_v6  ;;  %v2192_v25 = vpop.eup %2191  ;;  %v1849_v47 = vadd.f32 -1.0, %v2190_v26  ;;  %v1215_v38 = vsel %vm1135_vm15, %v2774_v48, %v1846_v30  ;;  %v1223_v48 = vld [vmem:[%s3014_s5 + $0x8] sm:$0xff] }
 0x24f   : > { %2086 = vmatpush1.bf16.msra.mxu1 %v2085_v63  ;;  %v2194_v49 = vpop.eup %2193  ;;  %v1851_v50 = vadd.f32 -1.0, %v2192_v25 }
 0x250   : > { %v1218_v34 = vsel %vm1138_vm12, %v2778_v53, %v1849_v47  ;;  %v2196_v55 = vpop.eup %2195  ;;  %v1848_v46 = vadd.f32 -1.0, %v2194_v49 }
 0x251   : > { %v2081_v31 = vpack.c.bf16 %v1218_v34, %v1214_v10  ;;  %v1220_v45 = vsel %vm1140_vm14, %v2780_v54, %v1851_v50  ;;  %v2198_v57 = vpop.eup %2197  ;;  %v1850_v58 = vadd.f32 -1.0, %v2196_v55 }
 0x252   : > { %v2089_v56 = vpack.c.bf16 %v1220_v45, %v1216_v51  ;;  %v1852_v37 = vadd.f32 -1.0, %v2198_v57  ;;  %v1217_v54 = vsel %vm1137_vm1, %v2776_v52, %v1848_v46  ;;  %v1224_v52 = vld [vmem:[%s3014_s5 + $0x10] sm:$0xff] }
 0x253   : > { %v1219_v53 = vsel %vm1139_vm0, %v2788_v1, %v1850_v58  ;;  %v1225_v1 = vld [vmem:[%s3014_s5 + $0x18] sm:$0xff] }
 0x254   : > { %v2079_v40 = vpack.c.bf16 %v1219_v53, %v1215_v38  ;;  %v1221_v44 = vsel %vm1141_vm3, %v2790_v8, %v1852_v37 }
 0x255   : > { %v2087_v60 = vpack.c.bf16 %v1221_v44, %v1217_v54 }
 0x256   : > { %2080 = vmatprep.subr.bf16.mxu0 %v2079_v40 }
 0x257   : > { %2088 = vmatprep.subr.bf16.mxu1 %v2087_v60  ;;  %2082 = vmatpush1.bf16.msra.mxu0 %v2081_v31 }
 0x258   : > { %2090 = vmatpush1.bf16.msra.mxu1 %v2089_v56 }
 0x25a   : > { %1853 = vmatmul.mubr.msk.f32.vlgmr.msra.gmra.mrb[16].mxu0 %vm935_vm2, %v1222_v61 }
 0x25b   : > { %1857 = vmatmul.mubr.msk.f32.vlgmr.msra.gmra.mrb[16].mxu1 %vm935_vm2, %v1222_v61  ;;  %1332 = vmatprep.mubr.f32.mxu0 %v2296_v7 }
 0x25c   : > { %1421 = vmatprep.mubr.f32.mxu1 %v2296_v7 }
 0x25e   : > { %1854 = vmatmul.mubr.msk.f32.gmra.mrb[18].mxu0 %vm935_vm2, %v1223_v48 }
 0x25f   : > { %1858 = vmatmul.mubr.msk.f32.gmra.mrb[18].mxu1 %vm935_vm2, %v1223_v48  ;;  %1338 = vmatprep.mubr.f32.mxu0 %v2296_v7 }
 0x260   : > { %1427 = vmatprep.mubr.f32.mxu1 %v2296_v7 }
 0x262   : > { %1855 = vmatmul.mubr.msk.f32.gmra.mrb[20].mxu0 %vm935_vm2, %v1224_v52 }
 0x263   : > { %1859 = vmatmul.mubr.msk.f32.gmra.mrb[20].mxu1 %vm935_vm2, %v1224_v52  ;;  %1344 = vmatprep.mubr.f32.mxu0 %v2296_v7 }
 0x264   : > { %1433 = vmatprep.mubr.f32.mxu1 %v2296_v7  ;;  %v1238_v7 = vpop.permute.xlu1 %1237 }
 0x266   : > { %1856 = vmatmul.mubr.msk.f32.gmra.mrb[22].mxu0 %vm935_vm2, %v1225_v1 }
 0x267   : > { %1860 = vmatmul.mubr.msk.f32.gmra.mrb[22].mxu1 %vm935_vm2, %v1225_v1 }
 0x268   : > { %v1248_v49 = vpop.permute.xlu1 %1247 }
 0x32d   : > { %v1328_v4 = vpop.f32.mrb[16].mxu0 }
 0x32e   : > { %v2862_v8 = vadd.f32 %v1328_v4, %v1233_v2  ;;  %v1417_v9 = vpop.f32.mrb[16].mxu1  ;;  %v1330_v12 = vpop.f32.mrb[17].mxu0 }
 0x32f   : > { %v2864_v13 = vadd.f32 %v1417_v9, %v1233_v2  ;;  %v2866_v14 = vadd.f32 %v1330_v12, %v1233_v2  ;;  %v1419_v15 = vpop.f32.mrb[17].mxu1 }
 0x330   : > { %v1456_v16 = vmin.f32 %v2862_v8, 0.0  ;;  %v2869_v19 = vadd.f32 %v1419_v15, %v1233_v2  ;;  %vm1440_vm2 = vcmp.gt.f32.partialorder %v2862_v8, 0.0 }
 0x331   : > { %v1458_v21 = vmin.f32 %v2864_v13, 0.0  ;;  %v1457_v59 = vmin.f32 %v2866_v14, 0.0  ;;  %v1334_v22 = vpop.f32.mrb[18].mxu0  ;;  %vm1442_vm4 = vcmp.gt.f32.partialorder %v2864_v13, 0.0  ;;  %vm1441_vm5 = vcmp.gt.f32.partialorder %v2866_v14, 0.0 }
 0x332   : > { %v1472_v23 = vmul.f32 1.442695, %v1456_v16  ;;  %v1459_v62 = vmin.f32 %v2869_v19, 0.0  ;;  %v2874_v27 = vadd.f32 %v1334_v22, %v1238_v7  ;;  %v1423_v28 = vpop.f32.mrb[18].mxu1  ;;  %v1336_v11 = vpop.f32.mrb[19].mxu0  ;;  %vm1443_vm6 = vcmp.gt.f32.partialorder %v2869_v19, 0.0 }
 0x333   : > { %v1476_v0 = vmul.f32 1.442695, %v1458_v21  ;;  %v1474_v29 = vmul.f32 1.442695, %v1457_v59  ;;  %v2876_v32 = vadd.f32 %v1423_v28, %v1238_v7  ;;  %v2878_v17 = vadd.f32 %v1336_v11, %v1238_v7  ;;  %v1425_v33 = vpop.f32.mrb[19].mxu1  ;;  %v1544_v28 = vpop.permute.xlu0 %1543 }
 0x334   : > { %2199 = vpow2.f32 %v1472_v23  ;;  %v1478_v5 = vmul.f32 1.442695, %v1459_v62  ;;  %v1460_v63 = vmin.f32 %v2874_v27, 0.0  ;;  %v2883_v39 = vadd.f32 %v1425_v33, %v1238_v7 }
 0x335   : > { %2201 = vpow2.f32 %v1476_v0  ;;  %v1462_v20 = vmin.f32 %v2876_v32, 0.0  ;;  %v1340_v36 = vpop.f32.mrb[20].mxu0  ;;  %v1461_v24 = vmin.f32 %v2878_v17, 0.0  ;;  %vm1444_vm7 = vcmp.gt.f32.partialorder %v2874_v27, 0.0 }
 0x336   : > { %2203 = vpow2.f32 %v1474_v29  ;;  %v1480_v18 = vmul.f32 1.442695, %v1460_v63  ;;  %v1429_v41 = vpop.f32.mrb[20].mxu1  ;;  %v1342_v6 = vpop.f32.mrb[21].mxu0  ;;  %v2885_v3 = vadd.f32 %v1340_v36, %v1243_v35  ;;  %v1463_v47 = vmin.f32 %v2883_v39, 0.0 }
 0x337   : > { %2205 = vpow2.f32 %v1478_v5  ;;  %v1484_v42 = vmul.f32 1.442695, %v1462_v20  ;;  %v2887_v26 = vadd.f32 %v1429_v41, %v1243_v35  ;;  %v1431_v43 = vpop.f32.mrb[21].mxu1  ;;  %v1482_v25 = vmul.f32 1.442695, %v1461_v24  ;;  %v1549_v63 = vpop.permute.xlu1 %1548 }
 0x338   : > { %2207 = vpow2.f32 %v1480_v18  ;;  %v1464_v50 = vmin.f32 %v2885_v3, 0.0  ;;  %v1486_v34 = vmul.f32 1.442695, %v1463_v47  ;;  %v2894_v30 = vadd.f32 %v1342_v6, %v1243_v35 }
 0x339   : > { %2209 = vpow2.f32 %v1484_v42  ;;  %v1346_v10 = vpop.f32.mrb[22].mxu0  ;;  %v1466_v51 = vmin.f32 %v2887_v26, 0.0  ;;  %v2896_v46 = vadd.f32 %v1431_v43, %v1243_v35  ;;  %vm1446_vm8 = vcmp.gt.f32.partialorder %v2876_v32, 0.0 }
 0x33a   : > { %2211 = vpow2.f32 %v1482_v25  ;;  %v1435_v31 = vpop.f32.mrb[22].mxu1  ;;  %v1348_v45 = vpop.f32.mrb[23].mxu0  ;;  %v1488_v55 = vmul.f32 1.442695, %v1464_v50  ;;  %v2898_v56 = vadd.f32 %v1346_v10, %v1248_v49  ;;  %v1465_v38 = vmin.f32 %v2894_v30, 0.0 }
 0x33b   : > { %v2900_v57 = vadd.f32 %v1435_v31, %v1248_v49  ;;  %v1437_v58 = vpop.f32.mrb[23].mxu1  ;;  %2213 = vpow2.f32 %v1486_v34  ;;  %v1492_v37 = vmul.f32 1.442695, %v1466_v51  ;;  %v1467_v53 = vmin.f32 %v2896_v46, 0.0 }
 0x33c   : > { %2215 = vpow2.f32 %v1488_v55  ;;  %v1490_v54 = vmul.f32 1.442695, %v1465_v38  ;;  %v1468_v44 = vmin.f32 %v2898_v56, 0.0  ;;  %vm1445_vm9 = vcmp.gt.f32.partialorder %v2878_v17, 0.0 }
 0x33d   : > { %2217 = vpow2.f32 %v1492_v37  ;;  %v1494_v48 = vmul.f32 1.442695, %v1467_v53  ;;  %v1470_v52 = vmin.f32 %v2900_v57, 0.0  ;;  %vm1447_vm10 = vcmp.gt.f32.partialorder %v2883_v39, 0.0 }
 0x33e   : > { %v2200_v40 = vpop.eup %2199  ;;  %2219 = vpow2.f32 %v1490_v54  ;;  %v1496_v4 = vmul.f32 1.442695, %v1468_v44  ;;  %v2912_v9 = vadd.f32 %v1348_v45, %v1248_v49  ;;  %vm1448_vm11 = vcmp.gt.f32.partialorder %v2885_v3, 0.0 }
 0x33f   : > { %v2202_v60 = vpop.eup %2201  ;;  %v1861_v61 = vadd.f32 -1.0, %v2200_v40  ;;  %2221 = vpow2.f32 %v1494_v48  ;;  %v1500_v7 = vmul.f32 1.442695, %v1470_v52  ;;  %v2921_v23 = vadd.f32 %v1437_v58, %v1248_v49  ;;  %v1554_v58 = vpop.permute.xlu0 %1553 }
 0x340   : > { %v2204_v1 = vpop.eup %2203  ;;  %v1863_v2 = vadd.f32 -1.0, %v2202_v60  ;;  %2223 = vpow2.f32 %v1496_v4  ;;  %vm1450_vm12 = vcmp.gt.f32.partialorder %v2887_v26, 0.0  ;;  %vm1449_vm13 = vcmp.gt.f32.partialorder %v2894_v30, 0.0 }
 0x341   : > { %v2206_v12 = vpop.eup %2205  ;;  %v1520_v15 = vsel %vm1440_vm2, %v2862_v8, %v1861_v61  ;;  %v1862_v16 = vadd.f32 -1.0, %v2204_v1  ;;  %2225 = vpow2.f32 %v1500_v7  ;;  %v1471_v42 = vmin.f32 %v2921_v23, 0.0 }
 0x342   : > { %v2208_v21 = vpop.eup %2207  ;;  %v1522_v59 = vsel %vm1442_vm4, %v2864_v13, %v1863_v2  ;;  %v1864_v22 = vadd.f32 -1.0, %v2206_v12  ;;  %v1561_v29 = vmul.f32 %v1544_v28, %v1520_v15  ;;  %vm1451_vm14 = vcmp.gt.f32.partialorder %v2896_v46, 0.0 }
 0x343   : > { %v2210_v62 = vpop.eup %2209  ;;  %v1521_v8 = vsel %vm1441_vm5, %v2866_v14, %v1862_v16  ;;  %v1865_v11 = vadd.f32 -1.0, %v2208_v21  ;;  %v1563_v33 = vmul.f32 %v1544_v28, %v1522_v59  ;;  %v1469_v14 = vmin.f32 %v2912_v9, 0.0  ;;  %v1559_v16 = vpop.permute.xlu1 %1558 }
 0x344   : > { %v2212_v0 = vpop.eup %2211  ;;  %v1523_v13 = vsel %vm1443_vm6, %v2869_v19, %v1864_v22  ;;  %v1867_v5 = vadd.f32 -1.0, %v2210_v62  ;;  %v1562_v35 = vmul.f32 %v1544_v28, %v1521_v8  ;;  %v1502_v51 = vmul.f32 1.442695, %v1471_v42 }
 0x345   : > { %v1524_v20 = vsel %vm1444_vm7, %v2874_v27, %v1865_v11  ;;  %v1866_v36 = vadd.f32 -1.0, %v2212_v0  ;;  %v2214_v18 = vpop.eup %2213  ;;  %v1564_v24 = vmul.f32 %v1544_v28, %v1523_v13  ;;  %v1498_v27 = vmul.f32 1.442695, %v1469_v14 }
 0x346   : > { %v1565_v41 = vmul.f32 %v1549_v63, %v1524_v20  ;;  %v1526_v6 = vsel %vm1446_vm8, %v2876_v32, %v1867_v5  ;;  %v2216_v19 = vpop.eup %2215  ;;  %v1868_v47 = vadd.f32 -1.0, %v2214_v18  ;;  %vm1452_vm15 = vcmp.gt.f32.partialorder %v2898_v56, 0.0 }
 0x347   : > { %v1567_v43 = vmul.f32 %v1549_v63, %v1526_v6  ;;  %v1525_v25 = vsel %vm1445_vm9, %v2878_v17, %v1866_v36  ;;  %v2218_v49 = vpop.eup %2217  ;;  %v1869_v34 = vadd.f32 -1.0, %v2216_v19  ;;  %2227 = vpow2.f32 %v1498_v27 }
 0x348   : > { %v1577_v50 = vadd.f32 %v1565_v41, %v1561_v29  ;;  %v1566_v10 = vmul.f32 %v1549_v63, %v1525_v25  ;;  %v1527_v32 = vsel %vm1447_vm10, %v2883_v39, %v1868_v47  ;;  %v1871_v45 = vadd.f32 -1.0, %v2218_v49  ;;  %v2220_v55 = vpop.eup %2219 }
 0x349   : > { %v1595_v31 = vadd.f32 %v1567_v43, %v1563_v33  ;;  %v1568_v38 = vmul.f32 %v1549_v63, %v1527_v32  ;;  %v1528_v17 = vsel %vm1448_vm11, %v2885_v3, %v1869_v34  ;;  %2229 = vpow2.f32 %v1502_v51  ;;  %v2222_v53 = vpop.eup %2221 }
 0x34a   : > { %v1586_v37 = vadd.f32 %v1566_v10, %v1562_v35  ;;  %v1569_v40 = vmul.f32 %v1554_v58, %v1528_v17  ;;  %v1530_v54 = vsel %vm1450_vm12, %v2887_v26, %v1871_v45  ;;  %v1870_v39 = vadd.f32 -1.0, %v2220_v55  ;;  %v2224_v44 = vpop.eup %2223 }
 0x34b   : > { %v1604_v60 = vadd.f32 %v1568_v38, %v1564_v24  ;;  %v1571_v61 = vmul.f32 %v1554_v58, %v1530_v54  ;;  %v1872_v48 = vadd.f32 -1.0, %v2222_v53  ;;  %v2226_v52 = vpop.eup %2225  ;;  %v1873_v2 = vadd.f32 -1.0, %v2224_v44 }
 0x34c   : > { %v1578_v1 = vadd.f32 %v1577_v50, %v1569_v40  ;;  %v1529_v3 = vsel %vm1449_vm13, %v2894_v30, %v1870_v39  ;;  %v1875_v15 = vadd.f32 -1.0, %v2226_v52  ;;  %vm1454_vm0 = vcmp.gt.f32.partialorder %v2900_v57, 0.0 }
 0x34d   : > { %v1596_v4 = vadd.f32 %v1595_v31, %v1571_v61  ;;  %v1570_v12 = vmul.f32 %v1554_v58, %v1529_v3  ;;  %v1531_v26 = vsel %vm1451_vm14, %v2896_v46, %v1872_v48  ;;  %v1532_v21 = vsel %vm1452_vm15, %v2898_v56, %v1873_v2 }
 0x34e   : > { %v1572_v7 = vmul.f32 %v1554_v58, %v1531_v26  ;;  %v1573_v22 = vmul.f32 %v1559_v16, %v1532_v21  ;;  %v1534_v62 = vsel %vm1454_vm0, %v2900_v57, %v1875_v15  ;;  %vm1453_vm1 = vcmp.gt.f32.partialorder %v2912_v9, 0.0 }
 0x34f   : > { %v1587_v59 = vadd.f32 %v1586_v37, %v1570_v12  ;;  %v1575_v30 = vmul.f32 %v1559_v16, %v1534_v62  ;;  %vm1455_vm3 = vcmp.gt.f32.partialorder %v2921_v23, 0.0  ;;  %v1618_v35 = vlaneseq }
 0x350   : > { %v1605_v28 = vadd.f32 %v1604_v60, %v1572_v7  ;;  %v1579_v8 = vadd.f32 %v1578_v1, %v1573_v22  ;;  %v2297_v34 = vmov 1966171168  }
 0x351   : > { %v2228_v11 = vpop.eup %2227  ;;  %v1597_v0 = vadd.f32 %v1596_v4, %v1575_v30  ;;  %v1619_v19 = vshrl.u32 %v1618_v35, 7  ;;  %v1633_v51 = vunpack.c.l.s4 %v2297_v34  ;;  %vm1657_vm2 = vcmp.lt.s32.totalorder %v1618_v35, 512 }
 0x352   : > { %v1580_v33 = vrot.slane %v1579_v8, 4  ;;  %v1874_v13 = vadd.f32 -1.0, %v2228_v11 }
 0x353   : > { %v2230_v29 = vpop.eup %2229  ;;  %v1598_v46 = vrot.slane %v1597_v0, 4  ;;  %v1620_v10 = vsub.s32 0, %v1619_v19  ;;  %v1634_v38 = vunpack.c.0.s8 %v1633_v51 }
 0x354   : > { %v1876_v5 = vadd.f32 -1.0, %v2230_v29  ;;  %v1581_v63 = vadd.f32 %v1580_v33, %v1579_v8  ;;  %v1533_v56 = vsel %vm1453_vm1, %v2912_v9, %v1874_v13 }
 0x355   : > { %v1599_v20 = vadd.f32 %v1598_v46, %v1597_v0  ;;  %v1574_v57 = vmul.f32 %v1559_v16, %v1533_v56  ;;  %v1637_v61 = vsub.s32 %v1634_v38, %v1619_v19 }
 0x356   : > { %v1535_v36 = vsel %vm1455_vm3, %v2921_v23, %v1876_v5  ;;  %v1582_v14 = vrot.slane %v1581_v63, 2  ;;  %v1616_v23 = vpop.permute.xlu0 %1615 }
 0x357   : > { %v1576_v18 = vmul.f32 %v1559_v16, %v1535_v36  ;;  %v1600_v24 = vrot.slane %v1599_v20, 2  ;;  %v1588_v41 = vadd.f32 %v1587_v59, %v1574_v57  ;;  %v1621_v17 = vrot.slane %v1616_v23, %v1620_v10 }
 0x358   : > { %v1583_v6 = vadd.f32 %v1582_v14, %v1581_v63 }
 0x359   : > { %v1606_v42 = vadd.f32 %v1605_v28, %v1576_v18  ;;  %v1601_v43 = vadd.f32 %v1600_v24, %v1599_v20  ;;  %v1589_v25 = vrot.slane %v1588_v41, 4 }
 0x35a   : > { %v1584_v27 = vrot.slane %v1583_v6, 1 }
 0x35b   : > { %v1607_v47 = vrot.slane %v1606_v42, 4  ;;  %v1590_v49 = vadd.f32 %v1589_v25, %v1588_v41  ;;  %v1602_v9 = vrot.slane %v1601_v43, 1 }
 0x35c   : > { %v1585_v45 = vadd.f32 %v1584_v27, %v1583_v6 }
 0x35d   : > { %v1608_v50 = vadd.f32 %v1607_v47, %v1606_v42  ;;  %v1591_v31 = vrot.slane %v1590_v49, 2  ;;  %v1603_v58 = vadd.f32 %v1602_v9, %v1601_v43 }
 0x35e   : > { %v1622_v39 = vadd.f32 %v1621_v17, %v1585_v45 }
 0x35f   : > { %v1609_v32 = vrot.slane %v1608_v50, 2  ;;  %v1592_v55 = vadd.f32 %v1591_v31, %v1590_v49  ;;  %v1624_v60 = vadd.f32 %v1621_v17, %v1603_v58 }
 0x361   : > { %v1610_v37 = vadd.f32 %v1609_v32, %v1608_v50  ;;  %v1593_v53 = vrot.slane %v1592_v55, 1 }
 0x363   : > { %v1611_v40 = vrot.slane %v1610_v37, 1  ;;  %v1594_v54 = vadd.f32 %v1593_v53, %v1592_v55 }
 0x365   : > { %v1612_v44 = vadd.f32 %v1611_v40, %v1610_v37  ;;  %v1623_v48 = vadd.f32 %v1621_v17, %v1594_v54 }
 0x367   : > { %v1625_v52 = vadd.f32 %v1621_v17, %v1612_v44  ;;  %v1630_v1 = vcombine.low %v1622_v39, %v1623_v48 }
 0x369   : > { %v1631_v3 = vcombine.low %v1624_v60, %v1625_v52  ;;  %v1638_v2 = vrot.slane %v1630_v1, %v1637_v61 }
 0x36b   : > { %v1645_v4 = vrot.slane %v1631_v3, %v1637_v61 }
 0x36d   : > { %v1646_v12 = vcombine.low %v1638_v2, %v1645_v4 }
 0x36f   : > { %v1653_v26 = vrot.slane %v1646_v12, %v1637_v61 }
 0x371   : > { %1659 = vst.msk [vmem:[%s328_s18] sm:$0xf] %vm1657_vm2, %v1653_v26 }
 0x372   : > { %2244 = shalt.err (!%p2241_p3)
}
 0x373   : > { %s2245_s22 = scalar_lea.hbm %s2967_s24, 64  ;;  %s2249_s17 = scalar_lea.hbm %s3018_s9, 128 }
 0x374   : > { %p2246_p4 = scmp.ne.s32.totalorder %s2967_s24, %s2245_s22  ;;  %p2250_p9 = scmp.lt.u32.totalorder %s2967_s24, %s3018_s9 }
 0x375   : > { %p2251_p10 = scmp.lt.u32.totalorder %s2249_s17, %s2245_s22  ;;  %p2253_p12 = scmp.lt.u32.totalorder %s2245_s22, %s2967_s24 }
 0x376   : > { %p2247_p7 = pnand %p2246_p4, %p2387_p5 }
 0x377   : > { %p2252_p11 = por %p2251_p10, %p2250_p9 }
 0x378   : > { %p2248_p8 = pneg %p2247_p7 }
 0x379   : > { %p2254_p13 = por %p2253_p12, %p2252_p11 }
 0x37b   : > { %p2255_p0 = pnand %p2254_p13, %p2248_p8 }
 0x37d   : > { %2258 = shalt.err (!%p2255_p0)
}
 0x37e   : > { %2091 = dma.vmem_to_hbm [thread:$0]  (%p2387_p5), %s2969_s23, 64, %s2967_s24, %s1661_s27  }
 0x37f PF: > { %p2097_p1 = scmp.ge.s32.totalorder %s2293_s14, 2  ;;  %s1687_s26 = sand.u32 1, %s2281_s11  }
 0x380   : > { %s1688_s28 = scalar_lea.sflag [#allocation4], %s1687_s26 }
 0x381   : > { %p2094_p2 = pnand %p2097_p1, %p2391_p6 }
 0x383   : > { %2276 = dma.done.wait (!%p2094_p2), %s1688_s28, 64  }
 0x384   : > { %2278 = vsyncadd (!%p2094_p2), %s1688_s28, 4294967232  ;;  %p21_p3 = scmp.ge.s32.totalorder %s2375_s16, 4   ;;  %s3023_s11 = smov %s2285_s12 }
 0x385   : > { %s3024_s12 = smov %s2289_s13  ;;  %s3025_s13 = smov %s2385_s19 }
 0x386   : > { %s3026_s14 = smov %s2375_s16  ;;  %23 = sbr.rel (!%p21_p3) target bundleno = 6 (0x6), region = 91 }
 0x38d   :  { %1693 = vsyncpa [#allocation4], 1 }
 0x38e   :  { %1695 = vsyncpa [#allocation4 + $0x1], 1 }

</bundles_post_ra>
